<compile_context>
chip_gen: v7x
topology: tpu7x:2x2x1
jax: 0.10.0
libtpu: 0.0.40
codegen_flags: <defaults>
</compile_context>

<pallas_src>
import jax
import jax.numpy as jnp
from jax.experimental import pallas as pl
from jax.experimental.pallas import tpu as pltpu

# ---- Model dims (consistent with the module) -------------------------------
NODE_FEATURE_DIM = 32
INPUT_DIM = 4 * NODE_FEATURE_DIM      # 128
HIDDEN1 = 1024
HIDDEN2 = 512
OUTPUT_DIM = 1

# ---- Kernel tiling ----------------------------------------------------------
LANE = 128        # lane-dense padded width for the 1-wide output
TM = 128          # rows per grid step; >=2 tiles at BATCH=256 keeps v7x's 2 TCs busy

BATCH = 256       # example batch (two row tiles; weights resident across both)


def _mlp_kernel(x_ref, w1_ref, b1_ref, w2_ref, b2_ref, w3_ref, b3_ref, o_ref):
    # Layer 1: (TM, 128) @ (128, 1024) -> (TM, 1024), f32 accumulate, bias+ReLU on VPU.
    h1 = jnp.dot(x_ref[...], w1_ref[...], preferred_element_type=jnp.float32)
    h1 = jnp.maximum(h1 + b1_ref[...], 0.0)

    # Layer 2: (TM, 1024) @ (1024, 512) -> (TM, 512), bias+ReLU.
    h2 = jnp.dot(h1.astype(jnp.bfloat16), w2_ref[...],
                 preferred_element_type=jnp.float32)
    h2 = jnp.maximum(h2 + b2_ref[...], 0.0)

    # Layer 3 (lane-dense): (TM, 512) @ (512, 128 padded) -> full unmasked store.
    out = jnp.dot(h2.astype(jnp.bfloat16), w3_ref[...],
                  preferred_element_type=jnp.float32)
    o_ref[...] = (out + b3_ref[...]).astype(o_ref.dtype)


@jax.jit
def feedforward(x, params):
    """x: (B, INPUT_DIM) float32.

    params: dict with w1,b1,w2,b2,w3,b3.  Weights are (in, out) bf16; biases
    (1, out) f32; w3/b3 are already zero-padded to LANE=128 output columns.
    """
    w1, b1, w2, b2, w3, b3 = (params[n] for n in ("w1", "b1", "w2", "b2", "w3", "b3"))
    B = x.shape[0]
    Bp = pl.cdiv(B, TM) * TM

    xb = x.astype(jnp.bfloat16)
    if Bp != B:
        xb = jnp.pad(xb, ((0, Bp - B), (0, 0)))

    grid = (Bp // TM,)

    out = pl.pallas_call(
        _mlp_kernel,
        out_shape=jax.ShapeDtypeStruct((Bp, LANE), jnp.float32),
        grid_spec=pltpu.PrefetchScalarGridSpec(
            num_scalar_prefetch=0,
            grid=grid,
            in_specs=[
                pl.BlockSpec((TM, INPUT_DIM),     lambda i: (i, 0)),  # x row tile
                pl.BlockSpec((INPUT_DIM, HIDDEN1), lambda i: (0, 0)),  # w1 (resident)
                pl.BlockSpec((1, HIDDEN1),         lambda i: (0, 0)),  # b1 (resident)
                pl.BlockSpec((HIDDEN1, HIDDEN2),   lambda i: (0, 0)),  # w2 (resident)
                pl.BlockSpec((1, HIDDEN2),         lambda i: (0, 0)),  # b2 (resident)
                pl.BlockSpec((HIDDEN2, LANE),      lambda i: (0, 0)),  # w3 padded (resident)
                pl.BlockSpec((1, LANE),            lambda i: (0, 0)),  # b3 padded (resident)
            ],
            out_specs=pl.BlockSpec((TM, LANE), lambda i: (i, 0)),
        ),
        compiler_params=pltpu.CompilerParams(
            dimension_semantics=("parallel",),
            vmem_limit_bytes=16 << 20,
        ),
    )(xb, w1, b1, w2, b2, w3, b3)

    return out[:B, :OUTPUT_DIM]


def init_params(key):
    """Deterministic init mimicking nn.Linear default (uniform +/- 1/sqrt(fan_in)).

    Weights are stored as (in, out) in bf16; biases stay f32 for the epilogues.
    Layer-3 weight/bias are zero-padded to LANE=128 columns here (once), so the
    jitted hot path is just the pallas_call.
    """
    ks = jax.random.split(key, 6)

    def linear(kw, kb, fan_in, fan_out):
        bound = 1.0 / jnp.sqrt(jnp.float32(fan_in))
        w = jax.random.uniform(kw, (fan_in, fan_out), jnp.float32, -bound, bound)
        b = jax.random.uniform(kb, (1, fan_out), jnp.float32, -bound, bound)
        return w.astype(jnp.bfloat16), b

    w1, b1 = linear(ks[0], ks[1], INPUT_DIM, HIDDEN1)
    w2, b2 = linear(ks[2], ks[3], HIDDEN1, HIDDEN2)
    w3, b3 = linear(ks[4], ks[5], HIDDEN2, OUTPUT_DIM)

    # Lane-dense layer 3: zero-pad (HIDDEN2, 1)/(1, 1) out to 128 columns.
    w3 = jnp.pad(w3, ((0, 0), (0, LANE - OUTPUT_DIM)))
    b3 = jnp.pad(b3, ((0, 0), (0, LANE - OUTPUT_DIM)))
    return dict(w1=w1, b1=b1, w2=w2, b2=b2, w3=w3, b3=b3)


def feedforward_ref(x, p):
    """Pure-JAX reference with the same bf16-weight / f32-accumulate numerics."""
    xb = x.astype(jnp.bfloat16)
    h1 = jnp.maximum(
        jnp.dot(xb, p["w1"], preferred_element_type=jnp.float32) + p["b1"], 0.0)
    h2 = jnp.maximum(
        jnp.dot(h1.astype(jnp.bfloat16), p["w2"],
                preferred_element_type=jnp.float32) + p["b2"], 0.0)
    out = jnp.dot(h2.astype(jnp.bfloat16), p["w3"],
                  preferred_element_type=jnp.float32) + p["b3"]
    return out[:, :OUTPUT_DIM]


if __name__ == "__main__":
    key = jax.random.PRNGKey(0)
    kx, kp = jax.random.split(key)
    x = jax.random.normal(kx, (BATCH, INPUT_DIM), jnp.float32)
    params = init_params(kp)

    out = jax.block_until_ready(feedforward(x, params))
    ref = feedforward_ref(x, params)

    assert out.shape == (BATCH, OUTPUT_DIM)
    assert bool(jnp.all(jnp.isfinite(out)))
    assert jnp.allclose(out, ref, atol=2e-2, rtol=2e-2), "mismatch vs pure-JAX reference"

    print("KERNEL_OK")
</pallas_src>

<mosaic_0001>
module attributes {stable_mosaic.version = 11 : i64} {
  func.func @_mlp_kernel(%arg0: i32, %arg1: memref<128x128xbf16, #tpu.memory_space<vmem>>, %arg2: memref<128x1024xbf16, #tpu.memory_space<vmem>>, %arg3: memref<1x1024xf32, #tpu.memory_space<vmem>>, %arg4: memref<1024x512xbf16, #tpu.memory_space<vmem>>, %arg5: memref<1x512xf32, #tpu.memory_space<vmem>>, %arg6: memref<512x128xbf16, #tpu.memory_space<vmem>>, %arg7: memref<1x128xf32, #tpu.memory_space<vmem>>, %arg8: memref<128x128xf32, #tpu.memory_space<vmem>>) attributes {dimension_semantics = [#tpu.dimension_semantics<parallel>], iteration_bounds = array<i64: 2>, scalar_prefetch = 0 : i64, scratch_operands = 0 : i64, tpu.core_type = #tpu.core_type<tc>, window_params = [{transform_indices = @transform_0, window_bounds = array<i64: 128, 128>}, {pipeline_mode = #tpu.pipeline_mode<synchronous>, transform_indices = @transform_1, window_bounds = array<i64: 128, 1024>}, {pipeline_mode = #tpu.pipeline_mode<synchronous>, transform_indices = @transform_2, window_bounds = array<i64: 1, 1024>}, {pipeline_mode = #tpu.pipeline_mode<synchronous>, transform_indices = @transform_3, window_bounds = array<i64: 1024, 512>}, {pipeline_mode = #tpu.pipeline_mode<synchronous>, transform_indices = @transform_4, window_bounds = array<i64: 1, 512>}, {pipeline_mode = #tpu.pipeline_mode<synchronous>, transform_indices = @transform_5, window_bounds = array<i64: 512, 128>}, {pipeline_mode = #tpu.pipeline_mode<synchronous>, transform_indices = @transform_6, window_bounds = array<i64: 1, 128>}, {transform_indices = @transform_7, window_bounds = array<i64: 128, 128>}]} {
    %c0 = arith.constant 0 : index
    %c0_0 = arith.constant 0 : index
    %0 = vector.load %arg1[%c0, %c0_0] : memref<128x128xbf16, #tpu.memory_space<vmem>>, vector<128x128xbf16>
    %c0_1 = arith.constant 0 : index
    %c0_2 = arith.constant 0 : index
    %1 = vector.load %arg2[%c0_1, %c0_2] : memref<128x1024xbf16, #tpu.memory_space<vmem>>, vector<128x1024xbf16>
    %cst = arith.constant dense<0.000000e+00> : vector<128x1024xf32>
    %2 = tpu.matmul %0, %1, %cst {dimension_numbers = #tpu.dot_dimension_numbers<[1], [0], [0], [1], [0, 0, 1, 1], [], []>} : vector<128x128xbf16>, vector<128x1024xbf16>, vector<128x1024xf32> -> vector<128x1024xf32>
    %c0_3 = arith.constant 0 : index
    %c0_4 = arith.constant 0 : index
    %3 = vector.load %arg3[%c0_3, %c0_4] : memref<1x1024xf32, #tpu.memory_space<vmem>>, vector<1x1024xf32>
    %4 = vector.broadcast %3 : vector<1x1024xf32> to vector<128x1024xf32>
    %5 = arith.addf %2, %4 : vector<128x1024xf32>
    %cst_5 = arith.constant 0.000000e+00 : f32
    %6 = vector.broadcast %cst_5 : f32 to vector<128x1024xf32>
    %7 = arith.maximumf %5, %6 : vector<128x1024xf32>
    %8 = arith.truncf %7 : vector<128x1024xf32> to vector<128x1024xbf16>
    %c0_6 = arith.constant 0 : index
    %c0_7 = arith.constant 0 : index
    %9 = vector.load %arg4[%c0_6, %c0_7] : memref<1024x512xbf16, #tpu.memory_space<vmem>>, vector<1024x512xbf16>
    %cst_8 = arith.constant dense<0.000000e+00> : vector<128x512xf32>
    %10 = tpu.matmul %8, %9, %cst_8 {dimension_numbers = #tpu.dot_dimension_numbers<[1], [0], [0], [1], [0, 0, 1, 1], [], []>} : vector<128x1024xbf16>, vector<1024x512xbf16>, vector<128x512xf32> -> vector<128x512xf32>
    %c0_9 = arith.constant 0 : index
    %c0_10 = arith.constant 0 : index
    %11 = vector.load %arg5[%c0_9, %c0_10] : memref<1x512xf32, #tpu.memory_space<vmem>>, vector<1x512xf32>
    %12 = vector.broadcast %11 : vector<1x512xf32> to vector<128x512xf32>
    %13 = arith.addf %10, %12 : vector<128x512xf32>
    %cst_11 = arith.constant 0.000000e+00 : f32
    %14 = vector.broadcast %cst_11 : f32 to vector<128x512xf32>
    %15 = arith.maximumf %13, %14 : vector<128x512xf32>
    %16 = arith.truncf %15 : vector<128x512xf32> to vector<128x512xbf16>
    %c0_12 = arith.constant 0 : index
    %c0_13 = arith.constant 0 : index
    %17 = vector.load %arg6[%c0_12, %c0_13] : memref<512x128xbf16, #tpu.memory_space<vmem>>, vector<512x128xbf16>
    %cst_14 = arith.constant dense<0.000000e+00> : vector<128x128xf32>
    %18 = tpu.matmul %16, %17, %cst_14 {dimension_numbers = #tpu.dot_dimension_numbers<[1], [0], [0], [1], [0, 0, 1, 1], [], []>} : vector<128x512xbf16>, vector<512x128xbf16>, vector<128x128xf32> -> vector<128x128xf32>
    %c0_15 = arith.constant 0 : index
    %c0_16 = arith.constant 0 : index
    %19 = vector.load %arg7[%c0_15, %c0_16] : memref<1x128xf32, #tpu.memory_space<vmem>>, vector<1x128xf32>
    %20 = vector.broadcast %19 : vector<1x128xf32> to vector<128x128xf32>
    %21 = arith.addf %18, %20 : vector<128x128xf32>
    %c0_17 = arith.constant 0 : index
    %c0_18 = arith.constant 0 : index
    %22 = vector.load %arg8[%c0_17, %c0_18] : memref<128x128xf32, #tpu.memory_space<vmem>>, vector<128x128xf32>
    tpu.vector_store %arg8[%c0_17, %c0_18], %21 {strides = array<i32>} : memref<128x128xf32, #tpu.memory_space<vmem>>, vector<128x128xf32>,
    return
  }
  func.func @transform_0(%arg0: i32) -> (i32, i32) {
    %c0_i32 = arith.constant 0 : i32
    %c0_i32_0 = arith.constant 0 : i32
    return %arg0, %c0_i32 : i32, i32
  }
  func.func @transform_1(%arg0: i32) -> (i32, i32) {
    %c0_i32 = arith.constant 0 : i32
    %c0_i32_0 = arith.constant 0 : i32
    %c0_i32_1 = arith.constant 0 : i32
    return %c0_i32, %c0_i32_0 : i32, i32
  }
  func.func @transform_2(%arg0: i32) -> (i32, i32) {
    %c0_i32 = arith.constant 0 : i32
    %c0_i32_0 = arith.constant 0 : i32
    %c0_i32_1 = arith.constant 0 : i32
    return %c0_i32, %c0_i32_0 : i32, i32
  }
  func.func @transform_3(%arg0: i32) -> (i32, i32) {
    %c0_i32 = arith.constant 0 : i32
    %c0_i32_0 = arith.constant 0 : i32
    %c0_i32_1 = arith.constant 0 : i32
    return %c0_i32, %c0_i32_0 : i32, i32
  }
  func.func @transform_4(%arg0: i32) -> (i32, i32) {
    %c0_i32 = arith.constant 0 : i32
    %c0_i32_0 = arith.constant 0 : i32
    %c0_i32_1 = arith.constant 0 : i32
    return %c0_i32, %c0_i32_0 : i32, i32
  }
  func.func @transform_5(%arg0: i32) -> (i32, i32) {
    %c0_i32 = arith.constant 0 : i32
    %c0_i32_0 = arith.constant 0 : i32
    %c0_i32_1 = arith.constant 0 : i32
    return %c0_i32, %c0_i32_0 : i32, i32
  }
  func.func @transform_6(%arg0: i32) -> (i32, i32) {
    %c0_i32 = arith.constant 0 : i32
    %c0_i32_0 = arith.constant 0 : i32
    %c0_i32_1 = arith.constant 0 : i32
    return %c0_i32, %c0_i32_0 : i32, i32
  }
  func.func @transform_7(%arg0: i32) -> (i32, i32) {
    %c0_i32 = arith.constant 0 : i32
    %c0_i32_0 = arith.constant 0 : i32
    return %arg0, %c0_i32 : i32, i32
  }
}

</mosaic_0001>

<bundles_post_ra>
// kernel: feedforward.1
= control target key start
LH: loop header
LB: loop body
LE: loop exit
PB: predicated region body
PF: predicated region fallthrough
CT: control target
= control target key end

     0   :  { %12 = vsyncpa [#allocation3], 0  ;;  %s6668_s0 = inlined_call_operand.vmem [shape: bf16[256,128], index: 0, kind: input, shape index: {}]   ;;  %s6669_s1 = inlined_call_operand.hbm [shape: bf16[128,1024], index: 1, kind: input, shape index: {}]   ;;  %s6670_s2 = inlined_call_operand.vmem [shape: f32[1,1024], index: 2, kind: input, shape index: {}]   ;;  %s6671_s3 = inlined_call_operand.hbm [shape: bf16[1024,512], index: 3, kind: input, shape index: {}]   ;;  %s6672_s4 = inlined_call_operand.vmem [shape: f32[1,512], index: 4, kind: input, shape index: {}]   ;;  %s6673_s5 = inlined_call_operand.vmem [shape: bf16[512,128], index: 5, kind: input, shape index: {}]   ;;  %s6674_s6 = inlined_call_operand.vmem [shape: f32[1,128], index: 6, kind: input, shape index: {}]   ;;  %s6675_s7 = inlined_call_operand.vmem [shape: f32[256,128], index: 7, kind: output, shape index: {}]  }
   0x1   :  { %13 = vsyncpa [#allocation5], 0  ;;  %s5893_s24 = smov 0  }
   0x2 LB: > { %s5846_s25 = smov [#allocation2]   ;;  %s4556_s27 = sadd.s32 4294967295, %s5844_s24   ;;  %s5844_s24 = sphi %s5893_s24, %s19_s24  }
   0x3   : > { %s214_s26 = sshll.u32 %s5846_s25, 4  ;;  %p4558_p0 = scmp.ge.s32.totalorder %s5844_s24, 1  ;;  %s215_s26 = int_to_ptr.vmem [resolvable:$true] %s214_s26 }
   0x4   : > { %p202_p1 = scmp.lt.s32.totalorder %s5844_s24, 3  ;;  %p5907_p3 = scmp.eq.s32.totalorder %s4556_s27, 0 }
   0x5   : > { %s5847_s30 = smov [#allocation4]   ;;  %s5774_s12 = scalar_lea.hbm %s6669_s1, 8192 }
   0x6   : > { %p5901_p2 = pnand %p4558_p0, %p202_p1  ;;  %s230_s8 = sshll.u32 %s5847_s30, 4  ;;  %s5919_s8 = int_to_ptr.vmem [resolvable:$true] %s230_s8 }
   0x7   : > { %s6680_s29 = scalar_select %p5907_p3, 1, 0 }
   0x8   : > { %s6679_s28 = scalar_select %p5901_p2, 1, 0 }
   0x9   : > { %p5324_p4 = pneg %p5901_p2  ;;  %p5775_p6 = scmp.ne.s32.totalorder %s6669_s1, %s5774_s12 }
   0xa   : > { %p5781_p10 = scmp.lt.u32.totalorder %s5774_s12, %s6669_s1 }
   0xb   : > { %p5915_p5 = pnand %p5907_p3, %p5324_p4 }
   0xd   : > { %p5776_p7 = pneg %p5915_p5 }
   0xf   : > { %p5777_p8 = pnand %p5776_p7, %p5775_p6 }
  0x11   : > { %p5778_p9 = pneg %p5777_p8 }
  0x13   : > { %p5783_p11 = pnand %p5781_p10, %p5778_p9 }
  0x15   : > { %5786 = shalt.err (!%p5783_p11)
}
  0x16   : > { %s5787_s17 = scalar_lea.vmem %s215_s26, 8192  ;;  %p5795_p1 = scmp.lt.s32.totalorder %s215_s26, %s215_s26 }
  0x17   : > { %p5788_p12 = scmp.ne.s32.totalorder %s215_s26, %s5787_s17  ;;  %p5796_p4 = scmp.lt.s32.totalorder %s5787_s17, %s5787_s17 }
  0x19   : > { %p5790_p13 = pnand %p5788_p12, %p5776_p7  ;;  %p5797_p3 = por %p5796_p4, %p5795_p1 }
  0x1b   : > { %p5791_p0 = pneg %p5790_p13 }
  0x1d   : > { %p5798_p2 = pnand %p5797_p3, %p5791_p0 }
  0x1f   : > { %5801 = shalt.err (!%p5798_p2)
}
  0x20   : > { %s5848_s18 = smov 512   ;;  %s5849_s19 = smov 32  }
  0x21   : > { %5327 = dma.hbm_to_vmem [thread:$0]  (!%p5915_p5), %s6669_s1, 8192, %s215_s26, [#allocation3], %s5848_s18, %s5848_s18, %s5849_s19  }
  0x22   : > { %s5802_s25 = scalar_lea.hbm %s6671_s3, 32768 }
  0x23   : > { %p5803_p6 = scmp.ne.s32.totalorder %s6671_s3, %s5802_s25  ;;  %p5809_p8 = scmp.lt.u32.totalorder %s5802_s25, %s6671_s3 }
  0x25   : > { %p5805_p2 = pnand %p5803_p6, %p5776_p7 }
  0x27   : > { %p5806_p3 = pneg %p5805_p2 }
  0x29   : > { %p5811_p9 = pnand %p5809_p8, %p5806_p3 }
  0x2b   : > { %5814 = shalt.err (!%p5811_p9)
}
  0x2c   : > { %s5815_s26 = scalar_lea.vmem %s5919_s8, 32768  ;;  %p5823_p13 = scmp.lt.s32.totalorder %s5919_s8, %s5919_s8 }
  0x2d   : > { %p5816_p10 = scmp.ne.s32.totalorder %s5919_s8, %s5815_s26  ;;  %p5824_p0 = scmp.lt.s32.totalorder %s5815_s26, %s5815_s26 }
  0x2f   : > { %p5818_p11 = pnand %p5816_p10, %p5776_p7  ;;  %p5825_p1 = por %p5824_p0, %p5823_p13 }
  0x31   : > { %p5819_p12 = pneg %p5818_p11 }
  0x33   : > { %p5826_p4 = pnand %p5825_p1, %p5819_p12 }
  0x35   : > { %5829 = shalt.err (!%p5826_p4)
}
  0x36   : > { %s5850_s13 = smov 256   ;;  %s5851_s14 = smov 16  }
  0x37   : > { %5330 = dma.hbm_to_vmem [thread:$0]  (!%p5915_p5), %s6671_s3, 32768, %s5919_s8, [#allocation5], %s5850_s13, %s5850_s13, %s5851_s14  }
  0x38   : > { %p6682_p6 = scmp.ne.s32.totalorder %s6679_s28, 0 }
  0x39   : > { %p6683_p7 = scmp.ne.s32.totalorder (!%p6682_p6), %s6680_s29, 0 }
  0x3a   : > { %264 = sbr.rel (%p6682_p6) target bundleno = 1018 (0x3fa), region = 48 }
  0x41   : > { %5835 = dma.done.wait (%p6683_p7), [#allocation3], 8192  }
  0x42   : > { %5837 = vsyncadd (%p6683_p7), [#allocation3], 4294959104 }
  0x43   : > { %5839 = dma.done.wait (%p6683_p7), [#allocation5], 32768  }
  0x44   : > { %5841 = vsyncadd (%p6683_p7), [#allocation5], 4294934528  ;;  %s4565_s9 = sshll.u32 %s4556_s27, 4  ;;  %v5852_v0 = vmov 0   ;;  %v329_v1 = vld [vmem:[#allocation2] sm:$0xff]  ;;  %v330_v17 = vld [vmem:[#allocation2 + $0x8] sm:$0xff] }
  0x45   : > { %835 = vmatprep.mubr.bf16.mxu0 %v5852_v0  ;;  %p301_p5 = scmp.lt.s32.totalorder %s4565_s9, 31  ;;  %948 = vmatprep.mubr.bf16.mxu1 %v5852_v0  ;;  %v333_v2 = vld [vmem:[#allocation2 + $0x20] sm:$0xff]  ;;  %v334_v18 = vld [vmem:[#allocation2 + $0x28] sm:$0xff]  ;;  %v331_v55 = vld [vmem:[#allocation2 + $0x10] sm:$0xff] }
  0x46   : > { %v337_v3 = vld [vmem:[#allocation2 + $0x40] sm:$0xff]  ;;  %v4578_v4 = vcombine.high %v329_v1, %v333_v2  ;;  %v4577_v5 = vcombine.low %v329_v1, %v333_v2  ;;  %v4580_v20 = vcombine.high %v330_v17, %v334_v18  ;;  %v4579_v21 = vcombine.low %v330_v17, %v334_v18  ;;  %v338_v22 = vld [vmem:[#allocation2 + $0x48] sm:$0xff]  ;;  %v335_v56 = vld [vmem:[#allocation2 + $0x30] sm:$0xff] }
  0x47   : > { %s6685_s9 = smov (!%p301_p5, %s4565_s9), 31  ;;  %v341_v6 = vld [vmem:[#allocation2 + $0x60] sm:$0xff]  ;;  %v342_v23 = vld [vmem:[#allocation2 + $0x68] sm:$0xff]  ;;  %v4582_v62 = vcombine.high %v331_v55, %v335_v56  ;;  %v339_v1 = vld [vmem:[#allocation2 + $0x50] sm:$0xff] }
  0x48   : > { %s4566_s28 = sshll.u32 %s6685_s9, 2  ;;  %v4586_v7 = vcombine.high %v337_v3, %v341_v6  ;;  %v345_v8 = vld [vmem:[#allocation2 + $0x80] sm:$0xff]  ;;  %803 = vmatprep.subr.bf16.mxu0 %v4578_v4  ;;  %v4585_v10 = vcombine.low %v337_v3, %v341_v6  ;;  %v346_v24 = vld [vmem:[#allocation2 + $0x88] sm:$0xff]  ;;  %916 = vmatprep.subr.bf16.mxu1 %v4580_v20  ;;  %v4588_v26 = vcombine.high %v338_v22, %v342_v23  ;;  %v343_v2 = vld [vmem:[#allocation2 + $0x70] sm:$0xff]  ;;  %s4568_s25 = sshll.u32 %s6685_s9, 3 }
  0x49   : > { %v349_v9 = vld [vmem:[#allocation2 + $0xa0] sm:$0xff]  ;;  %804 = vmatpush1.bf16.msra.mxu0 %v4577_v5  ;;  %s5988_s8 = scalar_lea.vmem %s6668_s0, %s4566_s28  ;;  %v350_v27 = vld [vmem:[#allocation2 + $0xa8] sm:$0xff]  ;;  %917 = vmatpush1.bf16.msra.mxu1 %v4579_v21  ;;  %v4587_v29 = vcombine.low %v338_v22, %v342_v23  ;;  %v4581_v5 = vcombine.low %v331_v55, %v335_v56  ;;  %v355_v17 = vld [vmem:[#allocation2 + $0xd0] sm:$0xff]  ;;  %s6632_s11 = scalar_lea.vmem %s6675_s7, %s4568_s25 }
  0x4a   : > { %805 = vmatprep.subr.bf16.mxu0 %v4586_v7  ;;  %v4594_v11 = vcombine.high %v345_v8, %v349_v9  ;;  %v353_v12 = vld [vmem:[#allocation2 + $0xc0] sm:$0xff]  ;;  %v4593_v14 = vcombine.low %v345_v8, %v349_v9  ;;  %918 = vmatprep.subr.bf16.mxu1 %v4588_v26  ;;  %v4596_v32 = vcombine.high %v346_v24, %v350_v27  ;;  %v354_v33 = vld [vmem:[#allocation2 + $0xc8] sm:$0xff]  ;;  %v347_v9 = vld [vmem:[#allocation2 + $0x90] sm:$0xff] }
  0x4b   : > { %v357_v13 = vld [vmem:[#allocation2 + $0xe0] sm:$0xff]  ;;  %v358_v34 = vld [vmem:[#allocation2 + $0xe8] sm:$0xff]  ;;  %v4595_v37 = vcombine.low %v346_v24, %v350_v27  ;;  %v4590_v7 = vcombine.high %v339_v1, %v343_v2  ;;  %v340_v20 = vld [vmem:[#allocation2 + $0x58] sm:$0xff] }
  0x4c   : > { %v4602_v15 = vcombine.high %v353_v12, %v357_v13  ;;  %v361_v16 = vld [vmem:[#allocation2 + $0x100] sm:$0xff]  ;;  %v4601_v25 = vcombine.low %v353_v12, %v357_v13  ;;  %v4604_v40 = vcombine.high %v354_v33, %v358_v34  ;;  %v362_v41 = vld [vmem:[#allocation2 + $0x108] sm:$0xff]  ;;  %v4603_v45 = vcombine.low %v354_v33, %v358_v34  ;;  %v336_v12 = vld [vmem:[#allocation2 + $0x38] sm:$0xff] }
  0x4d   : > { %806 = vmatpush1.bf16.msra.mxu0 %v4585_v10  ;;  %v365_v19 = vld [vmem:[#allocation2 + $0x120] sm:$0xff]  ;;  %919 = vmatpush1.bf16.msra.mxu1 %v4587_v29  ;;  %v366_v42 = vld [vmem:[#allocation2 + $0x128] sm:$0xff]  ;;  %v351_v10 = vld [vmem:[#allocation2 + $0xb0] sm:$0xff]  ;;  %v4589_v13 = vcombine.low %v339_v1, %v343_v2 }
  0x4e   : > { %807 = vmatprep.subr.bf16.mxu0 %v4594_v11  ;;  %v4610_v28 = vcombine.high %v361_v16, %v365_v19  ;;  %v369_v30 = vld [vmem:[#allocation2 + $0x140] sm:$0xff]  ;;  %v4609_v35 = vcombine.low %v361_v16, %v365_v19  ;;  %920 = vmatprep.subr.bf16.mxu1 %v4596_v32  ;;  %v4612_v48 = vcombine.high %v362_v41, %v366_v42  ;;  %v370_v49 = vld [vmem:[#allocation2 + $0x148] sm:$0xff]  ;;  %v332_v11 = vld [vmem:[#allocation2 + $0x18] sm:$0xff] }
  0x4f   : > { %v373_v31 = vld [vmem:[#allocation2 + $0x160] sm:$0xff]  ;;  %v374_v50 = vld [vmem:[#allocation2 + $0x168] sm:$0xff]  ;;  %v4611_v53 = vcombine.low %v362_v41, %v366_v42  ;;  %v4584_v18 = vcombine.high %v332_v11, %v336_v12  ;;  %v359_v19 = vld [vmem:[#allocation2 + $0xf0] sm:$0xff]  ;;  %v4597_v22 = vcombine.low %v347_v9, %v351_v10 }
  0x50   : > { %v4618_v36 = vcombine.high %v369_v30, %v373_v31  ;;  %v377_v38 = vld [vmem:[#allocation2 + $0x180] sm:$0xff]  ;;  %v4617_v43 = vcombine.low %v369_v30, %v373_v31  ;;  %v4620_v54 = vcombine.high %v370_v49, %v374_v50  ;;  %v378_v57 = vld [vmem:[#allocation2 + $0x188] sm:$0xff]  ;;  %v4619_v61 = vcombine.low %v370_v49, %v374_v50  ;;  %v344_v21 = vld [vmem:[#allocation2 + $0x78] sm:$0xff] }
  0x51   : > { %808 = vmatpush1.bf16.msra.mxu0 %v4593_v14  ;;  %v381_v39 = vld [vmem:[#allocation2 + $0x1a0] sm:$0xff]  ;;  %921 = vmatpush1.bf16.msra.mxu1 %v4595_v37  ;;  %v382_v58 = vld [vmem:[#allocation2 + $0x1a8] sm:$0xff]  ;;  %v4606_v23 = vcombine.high %v355_v17, %v359_v19  ;;  %v363_v24 = vld [vmem:[#allocation2 + $0x110] sm:$0xff]  ;;  %v4592_v27 = vcombine.high %v340_v20, %v344_v21  ;;  %v4605_v30 = vcombine.low %v355_v17, %v359_v19 }
  0x52   : > { %809 = vmatprep.subr.bf16.mxu0 %v4602_v15  ;;  %v4626_v44 = vcombine.high %v377_v38, %v381_v39  ;;  %v385_v46 = vld [vmem:[#allocation2 + $0x1c0] sm:$0xff]  ;;  %922 = vmatprep.subr.bf16.mxu1 %v4604_v40  ;;  %v4625_v51 = vcombine.low %v377_v38, %v381_v39  ;;  %v4628_v63 = vcombine.high %v378_v57, %v382_v58  ;;  %v386_v3 = vld [vmem:[#allocation2 + $0x1c8] sm:$0xff]  ;;  %v367_v26 = vld [vmem:[#allocation2 + $0x130] sm:$0xff] }
  0x53   : > { %v389_v47 = vld [vmem:[#allocation2 + $0x1e0] sm:$0xff]  ;;  %v390_v4 = vld [vmem:[#allocation2 + $0x1e8] sm:$0xff]  ;;  %v4627_v6 = vcombine.low %v378_v57, %v382_v58  ;;  %v4598_v15 = vcombine.high %v347_v9, %v351_v10  ;;  %v352_v29 = vld [vmem:[#allocation2 + $0xb8] sm:$0xff]  ;;  %v4614_v32 = vcombine.high %v363_v24, %v367_v26  ;;  %v4591_v34 = vcombine.low %v340_v20, %v344_v21 }
  0x54   : > { %v4634_v52 = vcombine.high %v385_v46, %v389_v47  ;;  %v4633_v59 = vcombine.low %v385_v46, %v389_v47  ;;  %v5991_v60 = vld [vmem:[%s5988_s8] sm:$0xff]   ;;  %v4636_v8 = vcombine.high %v386_v3, %v390_v4  ;;  %v4635_v14 = vcombine.low %v386_v3, %v390_v4  ;;  %v5996_v16 = vld [vmem:[%s5988_s8 + $0x8] sm:$0xff]   ;;  %v6003_v31 = vld [vmem:[%s5988_s8 + $0x10] sm:$0xff]  }
  0x55   : > { %810 = vmatpush1.bf16.msra.mxu0 %v4601_v25  ;;  %923 = vmatpush1.bf16.msra.mxu1 %v4603_v45  ;;  %v4583_v25 = vcombine.low %v332_v11, %v336_v12  ;;  %v371_v33 = vld [vmem:[#allocation2 + $0x150] sm:$0xff]  ;;  %v356_v37 = vld [vmem:[#allocation2 + $0xd8] sm:$0xff]  ;;  %v4613_v39 = vcombine.low %v363_v24, %v367_v26  ;;  %v6017_v3 = vld [vmem:[%s5988_s8 + $0x20] sm:$0xff]  }
  0x56   : > { %811 = vmatprep.subr.bf16.mxu0 %v4610_v28  ;;  %924 = vmatprep.subr.bf16.mxu1 %v4612_v48  ;;  %v348_v28 = vld [vmem:[#allocation2 + $0x98] sm:$0xff]  ;;  %v379_v41 = vld [vmem:[#allocation2 + $0x190] sm:$0xff]  ;;  %v6023_v9 = vld [vmem:[%s5988_s8 + $0x28] sm:$0xff]  }
  0x57   : > { %v360_v38 = vld [vmem:[#allocation2 + $0xf8] sm:$0xff]  ;;  %v4599_v42 = vcombine.low %v348_v28, %v352_v29  ;;  %v387_v50 = vld [vmem:[#allocation2 + $0x1d0] sm:$0xff] }
  0x58   : > { %v364_v45 = vld [vmem:[#allocation2 + $0x118] sm:$0xff]  ;;  %v5360_v2 = vld [vmem:[#allocation4 + $0x4] ss:$16 sps:$4 sm:$0xff]   ;;  %v5364_v17 = vld [vmem:[#allocation4 + $0x20] ss:$16 sps:$4 sm:$0xff]  }
  0x59   : > { %812 = vmatpush1.bf16.msra.mxu0 %v4609_v35  ;;  %925 = vmatpush1.bf16.msra.mxu1 %v4611_v53  ;;  %v375_v35 = vld [vmem:[#allocation2 + $0x170] sm:$0xff]  ;;  %v368_v46 = vld [vmem:[#allocation2 + $0x138] sm:$0xff] }
  0x5a   : > { %813 = vmatprep.subr.bf16.mxu0 %v4618_v36  ;;  %926 = vmatprep.subr.bf16.mxu1 %v4620_v54  ;;  %v4600_v36 = vcombine.high %v348_v28, %v352_v29  ;;  %v4622_v40 = vcombine.high %v371_v33, %v375_v35  ;;  %v4621_v47 = vcombine.low %v371_v33, %v375_v35  ;;  %v6010_v48 = vld [vmem:[%s5988_s8 + $0x18] sm:$0xff]   ;;  %v6030_v12 = vld [vmem:[%s5988_s8 + $0x30] sm:$0xff]  }
  0x5b   : > { %v4616_v53 = vcombine.high %v364_v45, %v368_v46  ;;  %v372_v54 = vld [vmem:[#allocation2 + $0x158] sm:$0xff]  ;;  %v4615_v58 = vcombine.low %v364_v45, %v368_v46  ;;  %v5370_v21 = vld [vmem:[#allocation4 + $0x40] ss:$16 sps:$4 sm:$0xff]   ;;  %v5384_v26 = vld [vmem:[#allocation4 + $0x84] ss:$16 sps:$4 sm:$0xff]  }
  0x5c   : > { %v376_v55 = vld [vmem:[#allocation2 + $0x178] sm:$0xff]  ;;  %v5382_v29 = vld [vmem:[#allocation4 + $0x80] ss:$16 sps:$4 sm:$0xff]   ;;  %v5396_v35 = vld [vmem:[#allocation4 + $0xc4] ss:$16 sps:$4 sm:$0xff]  }
  0x5d   : > { %814 = vmatpush1.bf16.msra.mxu0 %v4617_v43  ;;  %927 = vmatpush1.bf16.msra.mxu1 %v4619_v61  ;;  %v383_v43 = vld [vmem:[#allocation2 + $0x1b0] sm:$0xff]  ;;  %v380_v61 = vld [vmem:[#allocation2 + $0x198] sm:$0xff]  ;;  %v4623_v1 = vcombine.low %v372_v54, %v376_v55 }
  0x5e   : > { %815 = vmatprep.subr.bf16.mxu0 %v4626_v44  ;;  %928 = vmatprep.subr.bf16.mxu1 %v4628_v63  ;;  %v4608_v44 = vcombine.high %v356_v37, %v360_v38  ;;  %v4630_v49 = vcombine.high %v379_v41, %v383_v43  ;;  %v4629_v56 = vcombine.low %v379_v41, %v383_v43  ;;  %v5363_v10 = vld [vmem:[#allocation4 + $0xc] ss:$16 sps:$4 sm:$0xff]   ;;  %v5361_v19 = vld [vmem:[#allocation4 + $0x8] ss:$16 sps:$4 sm:$0xff]   ;;  %v5388_v33 = vld [vmem:[#allocation4 + $0xa0] ss:$16 sps:$4 sm:$0xff]  }
  0x5f   : > { %v5369_v20 = vld [vmem:[#allocation4 + $0x2c] ss:$16 sps:$4 sm:$0xff]   ;;  %v5397_v41 = vld [vmem:[#allocation4 + $0xc8] ss:$16 sps:$4 sm:$0xff]  }
  0x60   : > { %v5375_v24 = vld [vmem:[#allocation4 + $0x4c] ss:$16 sps:$4 sm:$0xff]   ;;  %v5403_v45 = vld [vmem:[#allocation4 + $0xe8] ss:$16 sps:$4 sm:$0xff]  }
  0x61   : > { %816 = vmatpush1.bf16.msra.mxu0 %v4625_v51  ;;  %929 = vmatpush1.bf16.msra.mxu1 %v4627_v6  ;;  %v4607_v51 = vcombine.low %v356_v37, %v360_v38  ;;  %v392_v6 = vld [vmem:[#allocation2 + $0x1f8] sm:$0xff]  ;;  %v5394_v37 = vld [vmem:[#allocation4 + $0xc0] ss:$16 sps:$4 sm:$0xff]  }
  0x62   : > { %817 = vmatprep.subr.bf16.mxu0 %v4634_v52  ;;  %930 = vmatprep.subr.bf16.mxu1 %v4636_v8  ;;  %v391_v52 = vld [vmem:[#allocation2 + $0x1f0] sm:$0xff]  ;;  %v5381_v28 = vld [vmem:[#allocation4 + $0x6c] ss:$16 sps:$4 sm:$0xff]   ;;  %v5391_v38 = vld [vmem:[#allocation4 + $0xa8] ss:$16 sps:$4 sm:$0xff]  }
  0x63   : > { %v4638_v57 = vcombine.high %v387_v50, %v391_v52  ;;  %v4637_v63 = vcombine.low %v387_v50, %v391_v52  ;;  %v5405_v43 = vld [vmem:[#allocation4 + $0xec] ss:$16 sps:$4 sm:$0xff]   ;;  %v5420_v50 = vld [vmem:[#allocation4 + $0x144] ss:$16 sps:$4 sm:$0xff]   ;;  %v5418_v52 = vld [vmem:[#allocation4 + $0x140] ss:$16 sps:$4 sm:$0xff]  }
  0x64   : > { %v5411_v46 = vld [vmem:[#allocation4 + $0x10c] ss:$16 sps:$4 sm:$0xff]  }
  0x65   : > { %818 = vmatpush1.bf16.msra.mxu0 %v4633_v59  ;;  %931 = vmatpush1.bf16.msra.mxu1 %v4635_v14  ;;  %v4624_v59 = vcombine.high %v372_v54, %v376_v55  ;;  %v5358_v14 = vld [vmem:[#allocation4] ss:$16 sps:$4 sm:$0xff]   ;;  %v5423_v54 = vld [vmem:[#allocation4 + $0x14c] ss:$16 sps:$4 sm:$0xff]  }
  0x66   : > { %1029 = vmatprep.subr.bf16.mxu0 %v4582_v62  ;;  %1142 = vmatprep.subr.bf16.mxu1 %v4584_v18  ;;  %v384_v62 = vld [vmem:[#allocation2 + $0x1b8] sm:$0xff]  ;;  %v5372_v18 = vld [vmem:[#allocation4 + $0x44] ss:$16 sps:$4 sm:$0xff]   ;;  %v5424_v55 = vld [vmem:[#allocation4 + $0x160] ss:$16 sps:$4 sm:$0xff]  }
  0x67   : > { %v4632_v4 = vcombine.high %v380_v61, %v384_v62 }
  0x68   : > { %836 = vmatmul.mubr.bf16.vlgmr.msra.gmra.mrb[0].mxu0 %v5991_v60  ;;  %949 = vmatmul.mubr.bf16.vlgmr.msra.gmra.mrb[0].mxu1 %v5991_v60 }
  0x69   : > { %845 = vmatprep.mubr.bf16.mxu0 %v5852_v0  ;;  %1030 = vmatpush1.bf16.msra.mxu0 %v4581_v5  ;;  %v388_v5 = vld [vmem:[#allocation2 + $0x1d8] sm:$0xff] }
  0x6a   : > { %1031 = vmatprep.subr.bf16.mxu0 %v4590_v7  ;;  %958 = vmatprep.mubr.bf16.mxu1 %v5852_v0  ;;  %v4631_v7 = vcombine.low %v380_v61, %v384_v62  ;;  %v4640_v8 = vcombine.high %v388_v5, %v392_v6  ;;  %v4639_v11 = vcombine.low %v388_v5, %v392_v6  ;;  %v5427_v61 = vld [vmem:[#allocation4 + $0x168] ss:$16 sps:$4 sm:$0xff]   ;;  %v5438_v62 = vld [vmem:[#allocation4 + $0x1a4] ss:$16 sps:$4 sm:$0xff]   ;;  %v5442_v5 = vld [vmem:[#allocation4 + $0x1c0] ss:$16 sps:$4 sm:$0xff]  }
  0x6b   : > { %1143 = vmatpush1.bf16.msra.mxu1 %v4583_v25  ;;  %v5376_v25 = vld [vmem:[#allocation4 + $0x60] ss:$16 sps:$4 sm:$0xff]   ;;  %v5439_v6 = vld [vmem:[#allocation4 + $0x1a8] ss:$16 sps:$4 sm:$0xff]  }
  0x6c   : > { %1144 = vmatprep.subr.bf16.mxu1 %v4592_v27  ;;  %v5373_v27 = vld [vmem:[#allocation4 + $0x48] ss:$16 sps:$4 sm:$0xff]  }
  0x6d   : > { %1032 = vmatpush1.bf16.msra.mxu0 %v4589_v13  ;;  %v6037_v13 = vld [vmem:[%s5988_s8 + $0x38] sm:$0xff]  }
  0x6e   : > { %1033 = vmatprep.subr.bf16.mxu0 %v4598_v15  ;;  %v5366_v15 = vld [vmem:[#allocation4 + $0x24] ss:$16 sps:$4 sm:$0xff]  }
  0x6f   : > { %1145 = vmatpush1.bf16.msra.mxu1 %v4591_v34  ;;  %v5385_v34 = vld [vmem:[#allocation4 + $0x88] ss:$16 sps:$4 sm:$0xff]  }
  0x70   : > { %846 = vmatmul.mubr.bf16.gmra.mrb[4].mxu0 %v5996_v16  ;;  %1146 = vmatprep.subr.bf16.mxu1 %v4600_v36  ;;  %v5393_v36 = vld [vmem:[#allocation4 + $0xac] ss:$16 sps:$4 sm:$0xff]  }
  0x71   : > { %855 = vmatprep.mubr.bf16.mxu0 %v5852_v0  ;;  %1034 = vmatpush1.bf16.msra.mxu0 %v4597_v22  ;;  %v5378_v22 = vld [vmem:[#allocation4 + $0x64] ss:$16 sps:$4 sm:$0xff]  }
  0x72   : > { %1035 = vmatprep.subr.bf16.mxu0 %v4606_v23  ;;  %959 = vmatmul.mubr.bf16.gmra.mrb[4].mxu1 %v5996_v16  ;;  %v5367_v23 = vld [vmem:[#allocation4 + $0x28] ss:$16 sps:$4 sm:$0xff]  }
  0x73   : > { %968 = vmatprep.mubr.bf16.mxu1 %v5852_v0  ;;  %1147 = vmatpush1.bf16.msra.mxu1 %v4599_v42  ;;  %v5408_v42 = vld [vmem:[#allocation4 + $0x104] ss:$16 sps:$4 sm:$0xff]  }
  0x74   : > { %1148 = vmatprep.subr.bf16.mxu1 %v4608_v44  ;;  %v5406_v44 = vld [vmem:[#allocation4 + $0x100] ss:$16 sps:$4 sm:$0xff]  }
  0x75   : > { %1036 = vmatpush1.bf16.msra.mxu0 %v4605_v30  ;;  %v5390_v30 = vld [vmem:[#allocation4 + $0xa4] ss:$16 sps:$4 sm:$0xff]  }
  0x76   : > { %1037 = vmatprep.subr.bf16.mxu0 %v4614_v32  ;;  %v5379_v32 = vld [vmem:[#allocation4 + $0x68] ss:$16 sps:$4 sm:$0xff]  }
  0x77   : > { %1149 = vmatpush1.bf16.msra.mxu1 %v4607_v51  ;;  %v5417_v51 = vld [vmem:[#allocation4 + $0x12c] ss:$16 sps:$4 sm:$0xff]  }
  0x78   : > { %856 = vmatmul.mubr.bf16.gmra.mrb[8].mxu0 %v6003_v31  ;;  %1150 = vmatprep.subr.bf16.mxu1 %v4616_v53  ;;  %v5415_v53 = vld [vmem:[#allocation4 + $0x128] ss:$16 sps:$4 sm:$0xff]  }
  0x79   : > { %865 = vmatprep.mubr.bf16.mxu0 %v5852_v0  ;;  %1038 = vmatpush1.bf16.msra.mxu0 %v4613_v39  ;;  %v5399_v39 = vld [vmem:[#allocation4 + $0xcc] ss:$16 sps:$4 sm:$0xff]  }
  0x7a   : > { %1039 = vmatprep.subr.bf16.mxu0 %v4622_v40  ;;  %969 = vmatmul.mubr.bf16.gmra.mrb[8].mxu1 %v6003_v31  ;;  %v5400_v40 = vld [vmem:[#allocation4 + $0xe0] ss:$16 sps:$4 sm:$0xff]  }
  0x7b   : > { %978 = vmatprep.mubr.bf16.mxu1 %v5852_v0  ;;  %1151 = vmatpush1.bf16.msra.mxu1 %v4615_v58  ;;  %v5429_v58 = vld [vmem:[#allocation4 + $0x16c] ss:$16 sps:$4 sm:$0xff]  }
  0x7c   : > { %1152 = vmatprep.subr.bf16.mxu1 %v4624_v59  ;;  %v5430_v59 = vld [vmem:[#allocation4 + $0x180] ss:$16 sps:$4 sm:$0xff]  }
  0x7d   : > { %1040 = vmatpush1.bf16.msra.mxu0 %v4621_v47  ;;  %v5412_v47 = vld [vmem:[#allocation4 + $0x120] ss:$16 sps:$4 sm:$0xff]  }
  0x7e   : > { %1041 = vmatprep.subr.bf16.mxu0 %v4630_v49  ;;  %v5409_v49 = vld [vmem:[#allocation4 + $0x108] ss:$16 sps:$4 sm:$0xff]  }
  0x7f   : > { %1153 = vmatpush1.bf16.msra.mxu1 %v4623_v1  ;;  %v5436_v1 = vld [vmem:[#allocation4 + $0x1a0] ss:$16 sps:$4 sm:$0xff]  }
  0x80   : > { %866 = vmatmul.mubr.bf16.gmra.mrb[12].mxu0 %v6010_v48  ;;  %1154 = vmatprep.subr.bf16.mxu1 %v4632_v4  ;;  %v5441_v4 = vld [vmem:[#allocation4 + $0x1ac] ss:$16 sps:$4 sm:$0xff]  }
  0x81   : > { %875 = vmatprep.mubr.bf16.mxu0 %v5852_v0  ;;  %1042 = vmatpush1.bf16.msra.mxu0 %v4629_v56  ;;  %v5421_v56 = vld [vmem:[#allocation4 + $0x148] ss:$16 sps:$4 sm:$0xff]  }
  0x82   : > { %1043 = vmatprep.subr.bf16.mxu0 %v4638_v57  ;;  %979 = vmatmul.mubr.bf16.gmra.mrb[12].mxu1 %v6010_v48  ;;  %v5432_v57 = vld [vmem:[#allocation4 + $0x184] ss:$16 sps:$4 sm:$0xff]  }
  0x83   : > { %988 = vmatprep.mubr.bf16.mxu1 %v5852_v0  ;;  %1155 = vmatpush1.bf16.msra.mxu1 %v4631_v7  ;;  %v5450_v7 = vld [vmem:[#allocation4 + $0x1e4] ss:$16 sps:$4 sm:$0xff]  }
  0x84   : > { %1156 = vmatprep.subr.bf16.mxu1 %v4640_v8  ;;  %v5447_v8 = vld [vmem:[#allocation4 + $0x1cc] ss:$16 sps:$4 sm:$0xff]  }
  0x85   : > { %1044 = vmatpush1.bf16.msra.mxu0 %v4637_v63  ;;  %v5435_v63 = vld [vmem:[#allocation4 + $0x18c] ss:$16 sps:$4 sm:$0xff]  }
  0x86   : > { %3005 = vmatprep.subr.bf16.mxu0 %v5360_v2  ;;  %v5433_v2 = vld [vmem:[#allocation4 + $0x188] ss:$16 sps:$4 sm:$0xff]  }
  0x87   : > { %1157 = vmatpush1.bf16.msra.mxu1 %v4639_v11  ;;  %v5445_v11 = vld [vmem:[#allocation4 + $0x1c8] ss:$16 sps:$4 sm:$0xff]  }
  0x88   : > { %876 = vmatmul.mubr.bf16.gmra.mrb[16].mxu0 %v6017_v3  ;;  %3457 = vmatprep.subr.bf16.mxu1 %v5363_v10  ;;  %v5456_v10 = vld [vmem:[#allocation4 + $0x204] ss:$16 sps:$4 sm:$0xff]  }
  0x89   : > { %885 = vmatprep.mubr.bf16.mxu0 %v5852_v0 }
  0x8a   : > { %989 = vmatmul.mubr.bf16.gmra.mrb[16].mxu1 %v6017_v3 }
  0x8b   : > { %998 = vmatprep.mubr.bf16.mxu1 %v5852_v0 }
  0x90   : > { %886 = vmatmul.mubr.bf16.gmra.mrb[20].mxu0 %v6023_v9 }
  0x91   : > { %895 = vmatprep.mubr.bf16.mxu0 %v5852_v0 }
  0x92   : > { %999 = vmatmul.mubr.bf16.gmra.mrb[20].mxu1 %v6023_v9 }
  0x93   : > { %1008 = vmatprep.mubr.bf16.mxu1 %v5852_v0 }
  0x98   : > { %896 = vmatmul.mubr.bf16.gmra.mrb[24].mxu0 %v6030_v12 }
  0x99   : > { %905 = vmatprep.mubr.bf16.mxu0 %v5852_v0 }
  0x9a   : > { %1009 = vmatmul.mubr.bf16.gmra.mrb[24].mxu1 %v6030_v12 }
  0x9b   : > { %1018 = vmatprep.mubr.bf16.mxu1 %v5852_v0 }
  0xa0   : > { %906 = vmatmul.mubr.bf16.gmra.mrb[28].mxu0 %v6037_v13 }
  0xa1   : > { %1061 = vmatprep.mubr.bf16.mxu0 %v5852_v0 }
  0xa2   : > { %1019 = vmatmul.mubr.bf16.gmra.mrb[28].mxu1 %v6037_v13 }
  0xa3   : > { %1174 = vmatprep.mubr.bf16.mxu1 %v5852_v0 }
  0xa8   : > { %1062 = vmatmul.mubr.bf16.vlgmr.msra.gmra.mrb[32].mxu0 %v5991_v60 }
  0xa9   : > { %1071 = vmatprep.mubr.bf16.mxu0 %v5852_v0  ;;  %3006 = vmatpush1.bf16.msra.mxu0 %v5358_v14  ;;  %v5453_v14 = vld [vmem:[#allocation4 + $0x1ec] ss:$16 sps:$4 sm:$0xff]  }
  0xaa   : > { %3007 = vmatprep.subr.bf16.mxu0 %v5366_v15  ;;  %1175 = vmatmul.mubr.bf16.vlgmr.msra.gmra.mrb[32].mxu1 %v5991_v60  ;;  %v5387_v60 = vld [vmem:[#allocation4 + $0x8c] ss:$16 sps:$4 sm:$0xff]   ;;  %v5451_v15 = vld [vmem:[#allocation4 + $0x1e8] ss:$16 sps:$4 sm:$0xff]  }
  0xab   : > { %3458 = vmatpush1.bf16.msra.mxu1 %v5361_v19  ;;  %1184 = vmatprep.mubr.bf16.mxu1 %v5852_v0  ;;  %v6082_v19 = vld [vmem:[%s6670_s2] sm:$0xff] }
  0xac   : > { %3459 = vmatprep.subr.bf16.mxu1 %v5369_v20 }
  0xad   : > { %3008 = vmatpush1.bf16.msra.mxu0 %v5364_v17  ;;  %v5459_v17 = vld [vmem:[#allocation4 + $0x20c] ss:$16 sps:$4 sm:$0xff]  }
  0xae   : > { %3009 = vmatprep.subr.bf16.mxu0 %v5372_v18 }
  0xaf   : > { %3460 = vmatpush1.bf16.msra.mxu1 %v5367_v23 }
  0xb0   : > { %1072 = vmatmul.mubr.bf16.gmra.mrb[36].mxu0 %v5996_v16  ;;  %3461 = vmatprep.subr.bf16.mxu1 %v5375_v24 }
  0xb1   : > { %1081 = vmatprep.mubr.bf16.mxu0 %v5852_v0  ;;  %3010 = vmatpush1.bf16.msra.mxu0 %v5370_v21 }
  0xb2   : > { %3011 = vmatprep.subr.bf16.mxu0 %v5378_v22  ;;  %1185 = vmatmul.mubr.bf16.gmra.mrb[36].mxu1 %v5996_v16  ;;  %v5402_v16 = vld [vmem:[#allocation4 + $0xe4] ss:$16 sps:$4 sm:$0xff]  }
  0xb3   : > { %3462 = vmatpush1.bf16.msra.mxu1 %v5373_v27  ;;  %1194 = vmatprep.mubr.bf16.mxu1 %v5852_v0 }
  0xb4   : > { %3463 = vmatprep.subr.bf16.mxu1 %v5381_v28 }
  0xb5   : > { %3012 = vmatpush1.bf16.msra.mxu0 %v5376_v25 }
  0xb6   : > { %3013 = vmatprep.subr.bf16.mxu0 %v5384_v26 }
  0xb7   : > { %3464 = vmatpush1.bf16.msra.mxu1 %v5379_v32 }
  0xb8   : > { %1082 = vmatmul.mubr.bf16.gmra.mrb[40].mxu0 %v6003_v31  ;;  %3465 = vmatprep.subr.bf16.mxu1 %v5387_v60 }
  0xb9   : > { %1091 = vmatprep.mubr.bf16.mxu0 %v5852_v0  ;;  %3014 = vmatpush1.bf16.msra.mxu0 %v5382_v29 }
  0xba   : > { %3015 = vmatprep.subr.bf16.mxu0 %v5390_v30  ;;  %1195 = vmatmul.mubr.bf16.gmra.mrb[40].mxu1 %v6003_v31  ;;  %v5414_v31 = vld [vmem:[#allocation4 + $0x124] ss:$16 sps:$4 sm:$0xff]  }
  0xbb   : > { %3466 = vmatpush1.bf16.msra.mxu1 %v5385_v34  ;;  %1204 = vmatprep.mubr.bf16.mxu1 %v5852_v0 }
  0xbc   : > { %3467 = vmatprep.subr.bf16.mxu1 %v5393_v36 }
  0xbd   : > { %3016 = vmatpush1.bf16.msra.mxu0 %v5388_v33 }
  0xbe   : > { %3017 = vmatprep.subr.bf16.mxu0 %v5396_v35 }
  0xbf   : > { %3468 = vmatpush1.bf16.msra.mxu1 %v5391_v38 }
  0xc0   : > { %1092 = vmatmul.mubr.bf16.gmra.mrb[44].mxu0 %v6010_v48  ;;  %3469 = vmatprep.subr.bf16.mxu1 %v5399_v39 }
  0xc1   : > { %1101 = vmatprep.mubr.bf16.mxu0 %v5852_v0  ;;  %3018 = vmatpush1.bf16.msra.mxu0 %v5394_v37 }
  0xc2   : > { %3019 = vmatprep.subr.bf16.mxu0 %v5402_v16  ;;  %1205 = vmatmul.mubr.bf16.gmra.mrb[44].mxu1 %v6010_v48  ;;  %v5426_v48 = vld [vmem:[#allocation4 + $0x164] ss:$16 sps:$4 sm:$0xff]  }
  0xc3   : > { %3470 = vmatpush1.bf16.msra.mxu1 %v5397_v41  ;;  %1214 = vmatprep.mubr.bf16.mxu1 %v5852_v0  ;;  %v5457_v41 = vld [vmem:[#allocation4 + $0x208] ss:$16 sps:$4 sm:$0xff]  }
  0xc4   : > { %3471 = vmatprep.subr.bf16.mxu1 %v5405_v43 }
  0xc5   : > { %3020 = vmatpush1.bf16.msra.mxu0 %v5400_v40  ;;  %v5454_v40 = vld [vmem:[#allocation4 + $0x200] ss:$16 sps:$4 sm:$0xff]  }
  0xc6   : > { %3021 = vmatprep.subr.bf16.mxu0 %v5408_v42 }
  0xc7   : > { %3472 = vmatpush1.bf16.msra.mxu1 %v5403_v45  ;;  %v5465_v45 = vld [vmem:[#allocation4 + $0x22c] ss:$16 sps:$4 sm:$0xff]  }
  0xc8   : > { %1102 = vmatmul.mubr.bf16.gmra.mrb[48].mxu0 %v6017_v3  ;;  %3473 = vmatprep.subr.bf16.mxu1 %v5411_v46 }
  0xc9   : > { %1111 = vmatprep.mubr.bf16.mxu0 %v5852_v0  ;;  %3022 = vmatpush1.bf16.msra.mxu0 %v5406_v44  ;;  %v5462_v44 = vld [vmem:[#allocation4 + $0x224] ss:$16 sps:$4 sm:$0xff]  }
  0xca   : > { %3023 = vmatprep.subr.bf16.mxu0 %v5414_v31  ;;  %1215 = vmatmul.mubr.bf16.gmra.mrb[48].mxu1 %v6017_v3  ;;  %v5444_v3 = vld [vmem:[#allocation4 + $0x1c4] ss:$16 sps:$4 sm:$0xff]  }
  0xcb   : > { %3474 = vmatpush1.bf16.msra.mxu1 %v5409_v49  ;;  %1224 = vmatprep.mubr.bf16.mxu1 %v5852_v0 }
  0xcc   : > { %3475 = vmatprep.subr.bf16.mxu1 %v5417_v51 }
  0xcd   : > { %3024 = vmatpush1.bf16.msra.mxu0 %v5412_v47 }
  0xce   : > { %3025 = vmatprep.subr.bf16.mxu0 %v5420_v50 }
  0xcf   : > { %3476 = vmatpush1.bf16.msra.mxu1 %v5415_v53  ;;  %v5460_v53 = vld [vmem:[#allocation4 + $0x220] ss:$16 sps:$4 sm:$0xff]  }
  0xd0   : > { %1112 = vmatmul.mubr.bf16.gmra.mrb[52].mxu0 %v6023_v9  ;;  %3477 = vmatprep.subr.bf16.mxu1 %v5423_v54 }
  0xd1   : > { %1121 = vmatprep.mubr.bf16.mxu0 %v5852_v0  ;;  %3026 = vmatpush1.bf16.msra.mxu0 %v5418_v52 }
  0xd2   : > { %3027 = vmatprep.subr.bf16.mxu0 %v5426_v48  ;;  %1225 = vmatmul.mubr.bf16.gmra.mrb[52].mxu1 %v6023_v9  ;;  %v5448_v9 = vld [vmem:[#allocation4 + $0x1e0] ss:$16 sps:$4 sm:$0xff]  }
  0xd3   : > { %3478 = vmatpush1.bf16.msra.mxu1 %v5421_v56  ;;  %1234 = vmatprep.mubr.bf16.mxu1 %v5852_v0  ;;  %v5463_v56 = vld [vmem:[#allocation4 + $0x228] ss:$16 sps:$4 sm:$0xff]  }
  0xd4   : > { %3479 = vmatprep.subr.bf16.mxu1 %v5429_v58 }
  0xd5   : > { %3028 = vmatpush1.bf16.msra.mxu0 %v5424_v55 }
  0xd6   : > { %3029 = vmatprep.subr.bf16.mxu0 %v5432_v57  ;;  %v5468_v57 = vld [vmem:[#allocation4 + $0x244] ss:$16 sps:$4 sm:$0xff]  }
  0xd7   : > { %3480 = vmatpush1.bf16.msra.mxu1 %v5427_v61 }
  0xd8   : > { %1122 = vmatmul.mubr.bf16.gmra.mrb[56].mxu0 %v6030_v12  ;;  %3481 = vmatprep.subr.bf16.mxu1 %v5435_v63 }
  0xd9   : > { %1131 = vmatprep.mubr.bf16.mxu0 %v5852_v0  ;;  %3030 = vmatpush1.bf16.msra.mxu0 %v5430_v59 }
  0xda   : > { %3031 = vmatprep.subr.bf16.mxu0 %v5438_v62  ;;  %1235 = vmatmul.mubr.bf16.gmra.mrb[56].mxu1 %v6030_v12  ;;  %v395_v12 = vlaneseq }
  0xdb   : > { %3482 = vmatpush1.bf16.msra.mxu1 %v5433_v2  ;;  %1244 = vmatprep.mubr.bf16.mxu1 %v5852_v0 }
  0xdc   : > { %3483 = vmatprep.subr.bf16.mxu1 %v5441_v4  ;;  %v6076_v0 = vshrl.u32 %v395_v12, 7 }
  0xdd   : > { %3032 = vmatpush1.bf16.msra.mxu0 %v5436_v1  ;;  %v5471_v1 = vld [vmem:[#allocation4 + $0x24c] ss:$16 sps:$4 sm:$0xff]  }
  0xde   : > { %3033 = vmatprep.subr.bf16.mxu0 %v5444_v3  ;;  %v397_v18 = vsub.s32 0, %v6076_v0  ;;  %v401_v20 = vsub.s32 1, %v6076_v0  ;;  %v405_v27 = vsub.s32 2, %v6076_v0  ;;  %v409_v30 = vsub.s32 3, %v6076_v0 }
  0xdf   : > { %3484 = vmatpush1.bf16.msra.mxu1 %v5439_v6 }
  0xe0   : > { %1132 = vmatmul.mubr.bf16.gmra.mrb[60].mxu0 %v6037_v13  ;;  %3485 = vmatprep.subr.bf16.mxu1 %v5447_v8  ;;  %v6093_v21 = vrot.slane %v6082_v19, %v401_v20  ;;  %v6104_v36 = vrot.slane %v6082_v19, %v405_v27  ;;  %v6109_v38 = vrot.slane %v6082_v19, %v409_v30 }
  0xe1   : > { %3034 = vmatpush1.bf16.msra.mxu0 %v5442_v5 }
  0xe2   : > { %3035 = vmatprep.subr.bf16.mxu0 %v5450_v7  ;;  %1245 = vmatmul.mubr.bf16.gmra.mrb[60].mxu1 %v6037_v13  ;;  %v6088_v13 = vrot.slane %v6082_v19, %v397_v18 }
  0xe3   : > { %3486 = vmatpush1.bf16.msra.mxu1 %v5445_v11  ;;  %v5466_v11 = vld [vmem:[#allocation4 + $0x240] ss:$16 sps:$4 sm:$0xff]  }
  0xe4   : > { %3487 = vmatprep.subr.bf16.mxu1 %v5453_v14  ;;  %v5469_v14 = vld [vmem:[#allocation4 + $0x248] ss:$16 sps:$4 sm:$0xff]  }
  0xe5   : > { %3036 = vmatpush1.bf16.msra.mxu0 %v5448_v9 }
  0xe6   : > { %3118 = vmatprep.subr.bf16.mxu0 %v5456_v10 }
  0xe7   : > { %3488 = vmatpush1.bf16.msra.mxu1 %v5451_v15 }
  0xe8   : > { %3570 = vmatprep.subr.bf16.mxu1 %v5459_v17 }
 0x13b   : > { %v837_v22 = vpop.f32.mrb[0].mxu0  ;;  %v950_v31 = vpop.f32.mrb[0].mxu1 }
 0x13c   : > { %v838_v23 = vadd.f32 %v837_v22, %v6088_v13  ;;  %v839_v24 = vpop.f32.mrb[1].mxu0  ;;  %v951_v49 = vadd.f32 %v950_v31, %v6104_v36  ;;  %v952_v50 = vpop.f32.mrb[1].mxu1  ;;  %v5474_v22 = vld [vmem:[#allocation4 + $0x264] ss:$16 sps:$4 sm:$0xff]   ;;  %v5483_v31 = vld [vmem:[#allocation4 + $0x28c] ss:$16 sps:$4 sm:$0xff]  }
 0x13d   : > { %v840_v25 = vadd.f32 %v839_v24, %v6093_v21  ;;  %v841_v26 = vpop.f32.mrb[2].mxu0  ;;  %v953_v48 = vadd.f32 %v952_v50, %v6109_v38  ;;  %v954_v54 = vpop.f32.mrb[2].mxu1 }
 0x13e   : > { %v842_v28 = vadd.f32 %v841_v26, %v6088_v13  ;;  %v843_v29 = vpop.f32.mrb[3].mxu0  ;;  %v1255_v60 = vmax.f32 %v838_v23, 0.0  ;;  %v1257_v58 = vmax.f32 %v951_v49, 0.0  ;;  %v955_v59 = vadd.f32 %v954_v54, %v6104_v36  ;;  %v956_v61 = vpop.f32.mrb[3].mxu1  ;;  %v5477_v23 = vld [vmem:[#allocation4 + $0x26c] ss:$16 sps:$4 sm:$0xff]  }
 0x13f   : > { %v844_v32 = vadd.f32 %v843_v29, %v6093_v21  ;;  %v1256_v34 = vmax.f32 %v840_v25, 0.0  ;;  %v1258_v2 = vmax.f32 %v953_v48, 0.0  ;;  %v957_v3 = vadd.f32 %v956_v61, %v6109_v38  ;;  %v5486_v61 = vld [vmem:[#allocation4 + $0x2a4] ss:$16 sps:$4 sm:$0xff]  }
 0x140   : > { %v1263_v33 = vmax.f32 %v842_v28, 0.0  ;;  %v1265_v6 = vmax.f32 %v955_v59, 0.0 }
 0x141   : > { %v1264_v35 = vmax.f32 %v844_v32, 0.0  ;;  %v1266_v8 = vmax.f32 %v957_v3, 0.0 }
 0x142   : > { %v1383_v37 = vpack.c.bf16 %v1263_v33, %v1255_v60  ;;  %v6119_v15 = vpack.c.bf16 %v1265_v6, %v1257_v58 }
 0x143   : > { %v1384_v16 = vpack.c.bf16 %v1264_v35, %v1256_v34  ;;  %v847_v39 = vpop.f32.mrb[4].mxu0  ;;  %v6122_v24 = vpack.c.bf16 %v1266_v8, %v1258_v2  ;;  %v5472_v34 = vld [vmem:[#allocation4 + $0x260] ss:$16 sps:$4 sm:$0xff]  }
 0x144   : > { %v848_v42 = vadd.f32 %v847_v39, %v6088_v13  ;;  %v849_v43 = vpop.f32.mrb[5].mxu0  ;;  %v5475_v39 = vld [vmem:[#allocation4 + $0x268] ss:$16 sps:$4 sm:$0xff]   ;;  %v5484_v8 = vld [vmem:[#allocation4 + $0x2a0] ss:$16 sps:$4 sm:$0xff]  }
 0x145   : > { %v850_v46 = vadd.f32 %v849_v43, %v6093_v21  ;;  %v851_v47 = vpop.f32.mrb[6].mxu0  ;;  %3037 = vmatprep.mubr.bf16.mxu0 %v1384_v16  ;;  %3489 = vmatprep.mubr.bf16.mxu1 %v1384_v16  ;;  %v960_v25 = vpop.f32.mrb[4].mxu1 }
 0x146   : > { %v852_v51 = vadd.f32 %v851_v47, %v6088_v13  ;;  %v853_v52 = vpop.f32.mrb[7].mxu0  ;;  %3038 = vmatmul.mubr.bf16.vlgmr.msra.gmra.mrb[64].mxu0 %v1383_v37  ;;  %3490 = vmatmul.mubr.bf16.vlgmr.msra.gmra.mrb[64].mxu1 %v1383_v37  ;;  %v1271_v62 = vmax.f32 %v848_v42, 0.0  ;;  %v961_v29 = vadd.f32 %v960_v25, %v6104_v36  ;;  %v962_v32 = vpop.f32.mrb[5].mxu1 }
 0x147   : > { %v854_v55 = vadd.f32 %v853_v52, %v6093_v21  ;;  %3119 = vmatpush1.bf16.msra.mxu0 %v5454_v40  ;;  %3571 = vmatpush1.bf16.msra.mxu1 %v5457_v41  ;;  %v1272_v4 = vmax.f32 %v850_v46, 0.0  ;;  %v963_v35 = vadd.f32 %v962_v32, %v6109_v38  ;;  %v964_v37 = vpop.f32.mrb[6].mxu1  ;;  %v5480_v40 = vld [vmem:[#allocation4 + $0x284] ss:$16 sps:$4 sm:$0xff]  }
 0x148   : > { %v1279_v63 = vmax.f32 %v852_v51, 0.0  ;;  %3120 = vmatprep.subr.bf16.mxu0 %v5462_v44  ;;  %3572 = vmatprep.subr.bf16.mxu1 %v5465_v45  ;;  %v1273_v41 = vmax.f32 %v961_v29, 0.0  ;;  %v965_v42 = vadd.f32 %v964_v37, %v6104_v36  ;;  %v966_v43 = vpop.f32.mrb[7].mxu1 }
 0x149   : > { %v1280_v5 = vmax.f32 %v854_v55, 0.0  ;;  %v1274_v46 = vmax.f32 %v963_v35, 0.0  ;;  %v967_v47 = vadd.f32 %v966_v43, %v6109_v38  ;;  %v5478_v55 = vld [vmem:[#allocation4 + $0x280] ss:$16 sps:$4 sm:$0xff]  }
 0x14a   : > { %v1391_v7 = vpack.c.bf16 %v1279_v63, %v1271_v62  ;;  %v1281_v51 = vmax.f32 %v965_v42, 0.0  ;;  %v5489_v62 = vld [vmem:[#allocation4 + $0x2ac] ss:$16 sps:$4 sm:$0xff]  }
 0x14b   : > { %v1392_v9 = vpack.c.bf16 %v1280_v5, %v1272_v4  ;;  %3121 = vmatpush1.bf16.msra.mxu0 %v5460_v53  ;;  %v857_v10 = vpop.f32.mrb[8].mxu0  ;;  %3573 = vmatpush1.bf16.msra.mxu1 %v5463_v56  ;;  %v1282_v53 = vmax.f32 %v967_v47, 0.0  ;;  %v5481_v56 = vld [vmem:[#allocation4 + $0x288] ss:$16 sps:$4 sm:$0xff]  }
 0x14c   : > { %v858_v17 = vadd.f32 %v857_v10, %v6088_v13  ;;  %v859_v12 = vpop.f32.mrb[9].mxu0  ;;  %3122 = vmatprep.subr.bf16.mxu0 %v5468_v57  ;;  %3574 = vmatprep.subr.bf16.mxu1 %v5471_v1  ;;  %v6131_v57 = vpack.c.bf16 %v1281_v51, %v1273_v41  ;;  %v5493_v41 = vld [vmem:[#allocation4 + $0x2c8] ss:$16 sps:$4 sm:$0xff]  }
 0x14d   : > { %v860_v26 = vadd.f32 %v859_v12, %v6093_v21  ;;  %v861_v28 = vpop.f32.mrb[10].mxu0  ;;  %3047 = vmatprep.mubr.bf16.mxu0 %v1392_v9  ;;  %3499 = vmatprep.mubr.bf16.mxu1 %v1392_v9  ;;  %v6134_v63 = vpack.c.bf16 %v1282_v53, %v1274_v46  ;;  %v970_v1 = vpop.f32.mrb[8].mxu1 }
 0x14e   : > { %v862_v60 = vadd.f32 %v861_v28, %v6088_v13  ;;  %v863_v33 = vpop.f32.mrb[11].mxu0  ;;  %3048 = vmatmul.mubr.bf16.gmra.mrb[68].mxu0 %v1391_v7  ;;  %3500 = vmatmul.mubr.bf16.gmra.mrb[68].mxu1 %v1391_v7  ;;  %v1287_v44 = vmax.f32 %v858_v17, 0.0  ;;  %v971_v4 = vadd.f32 %v970_v1, %v6104_v36  ;;  %v972_v5 = vpop.f32.mrb[9].mxu1  ;;  %v5492_v17 = vld [vmem:[#allocation4 + $0x2c4] ss:$16 sps:$4 sm:$0xff]  }
 0x14f   : > { %v864_v16 = vadd.f32 %v863_v33, %v6093_v21  ;;  %3123 = vmatpush1.bf16.msra.mxu0 %v5466_v11  ;;  %3575 = vmatpush1.bf16.msra.mxu1 %v5469_v14  ;;  %v1288_v49 = vmax.f32 %v860_v26, 0.0  ;;  %v973_v9 = vadd.f32 %v972_v5, %v6109_v38  ;;  %v974_v10 = vpop.f32.mrb[10].mxu1  ;;  %v5487_v14 = vld [vmem:[#allocation4 + $0x2a8] ss:$16 sps:$4 sm:$0xff]   ;;  %v5495_v28 = vld [vmem:[#allocation4 + $0x2cc] ss:$16 sps:$4 sm:$0xff]  }
 0x150   : > { %v1295_v45 = vmax.f32 %v862_v60, 0.0  ;;  %3124 = vmatprep.subr.bf16.mxu0 %v5474_v22  ;;  %3576 = vmatprep.subr.bf16.mxu1 %v5477_v23  ;;  %v1289_v12 = vmax.f32 %v971_v4, 0.0  ;;  %v975_v22 = vadd.f32 %v974_v10, %v6104_v36  ;;  %v976_v23 = vpop.f32.mrb[11].mxu1  ;;  %v5507_v5 = vld [vmem:[#allocation4 + $0x30c] ss:$16 sps:$4 sm:$0xff]  }
 0x151   : > { %v1296_v50 = vmax.f32 %v864_v16, 0.0  ;;  %v1290_v29 = vmax.f32 %v973_v9, 0.0  ;;  %v977_v32 = vadd.f32 %v976_v23, %v6109_v38  ;;  %v5505_v23 = vld [vmem:[#allocation4 + $0x308] ss:$16 sps:$4 sm:$0xff]  }
 0x152   : > { %v1399_v52 = vpack.c.bf16 %v1295_v45, %v1287_v44  ;;  %v5498_v45 = vld [vmem:[#allocation4 + $0x2e4] ss:$16 sps:$4 sm:$0xff]  }
 0x153   : > { %v1400_v48 = vpack.c.bf16 %v1296_v50, %v1288_v49  ;;  %3125 = vmatpush1.bf16.msra.mxu0 %v5472_v34  ;;  %v867_v54 = vpop.f32.mrb[12].mxu0  ;;  %3577 = vmatpush1.bf16.msra.mxu1 %v5475_v39  ;;  %v1297_v34 = vmax.f32 %v975_v22, 0.0  ;;  %v1298_v37 = vmax.f32 %v977_v32, 0.0  ;;  %v5502_v22 = vld [vmem:[#allocation4 + $0x300] ss:$16 sps:$4 sm:$0xff]  }
 0x154   : > { %v868_v58 = vadd.f32 %v867_v54, %v6088_v13  ;;  %v869_v59 = vpop.f32.mrb[13].mxu0  ;;  %3126 = vmatprep.subr.bf16.mxu0 %v5480_v40  ;;  %3578 = vmatprep.subr.bf16.mxu1 %v5483_v31  ;;  %v5490_v40 = vld [vmem:[#allocation4 + $0x2c0] ss:$16 sps:$4 sm:$0xff]   ;;  %v5501_v31 = vld [vmem:[#allocation4 + $0x2ec] ss:$16 sps:$4 sm:$0xff]  }
 0x155   : > { %v870_v2 = vadd.f32 %v869_v59, %v6093_v21  ;;  %v871_v3 = vpop.f32.mrb[14].mxu0  ;;  %3057 = vmatprep.mubr.bf16.mxu0 %v1400_v48  ;;  %3509 = vmatprep.mubr.bf16.mxu1 %v1400_v48  ;;  %v6143_v42 = vpack.c.bf16 %v1297_v34, %v1289_v12  ;;  %v6146_v46 = vpack.c.bf16 %v1298_v37, %v1290_v29  ;;  %v980_v47 = vpop.f32.mrb[12].mxu1  ;;  %v5496_v54 = vld [vmem:[#allocation4 + $0x2e0] ss:$16 sps:$4 sm:$0xff]   ;;  %v5499_v59 = vld [vmem:[#allocation4 + $0x2e8] ss:$16 sps:$4 sm:$0xff]  }
 0x156   : > { %v872_v6 = vadd.f32 %v871_v3, %v6088_v13  ;;  %v873_v7 = vpop.f32.mrb[15].mxu0  ;;  %3058 = vmatmul.mubr.bf16.gmra.mrb[72].mxu0 %v1399_v52  ;;  %3510 = vmatmul.mubr.bf16.gmra.mrb[72].mxu1 %v1399_v52  ;;  %v1303_v25 = vmax.f32 %v868_v58, 0.0  ;;  %v981_v51 = vadd.f32 %v980_v47, %v6104_v36  ;;  %v982_v52 = vpop.f32.mrb[13].mxu1  ;;  %v5510_v29 = vld [vmem:[#allocation4 + $0x324] ss:$16 sps:$4 sm:$0xff]  }
 0x157   : > { %v874_v11 = vadd.f32 %v873_v7, %v6093_v21  ;;  %3127 = vmatpush1.bf16.msra.mxu0 %v5478_v55  ;;  %3579 = vmatpush1.bf16.msra.mxu1 %v5481_v56  ;;  %v1304_v60 = vmax.f32 %v870_v2, 0.0  ;;  %v983_v55 = vadd.f32 %v982_v52, %v6109_v38  ;;  %v984_v56 = vpop.f32.mrb[14].mxu1  ;;  %v5513_v32 = vld [vmem:[#allocation4 + $0x32c] ss:$16 sps:$4 sm:$0xff]   ;;  %v5516_v47 = vld [vmem:[#allocation4 + $0x344] ss:$16 sps:$4 sm:$0xff]  }
 0x158   : > { %v1311_v26 = vmax.f32 %v872_v6, 0.0  ;;  %3128 = vmatprep.subr.bf16.mxu0 %v5486_v61  ;;  %3580 = vmatprep.subr.bf16.mxu1 %v5489_v62  ;;  %v5504_v61 = vld [vmem:[#allocation4 + $0x304] ss:$16 sps:$4 sm:$0xff]   ;;  %v1305_v62 = vmax.f32 %v981_v51, 0.0  ;;  %v985_v1 = vadd.f32 %v984_v56, %v6104_v36  ;;  %v986_v2 = vpop.f32.mrb[15].mxu1 }
 0x159   : > { %v1312_v33 = vmax.f32 %v874_v11, 0.0  ;;  %v1306_v6 = vmax.f32 %v983_v55, 0.0  ;;  %v987_v7 = vadd.f32 %v986_v2, %v6109_v38 }
 0x15a   : > { %v1407_v35 = vpack.c.bf16 %v1311_v26, %v1303_v25  ;;  %v1313_v10 = vmax.f32 %v985_v1, 0.0 }
 0x15b   : > { %v1408_v16 = vpack.c.bf16 %v1312_v33, %v1304_v60  ;;  %3129 = vmatpush1.bf16.msra.mxu0 %v5484_v8  ;;  %v877_v39 = vpop.f32.mrb[16].mxu0  ;;  %3581 = vmatpush1.bf16.msra.mxu1 %v5487_v14  ;;  %v1314_v14 = vmax.f32 %v987_v7, 0.0 }
 0x15c   : > { %v878_v43 = vadd.f32 %v877_v39, %v6088_v13  ;;  %v879_v44 = vpop.f32.mrb[17].mxu0  ;;  %3130 = vmatprep.subr.bf16.mxu0 %v5492_v17  ;;  %3582 = vmatprep.subr.bf16.mxu1 %v5495_v28  ;;  %v6155_v25 = vpack.c.bf16 %v1313_v10, %v1305_v62 }
 0x15d   : > { %v880_v49 = vadd.f32 %v879_v44, %v6093_v21  ;;  %v881_v50 = vpop.f32.mrb[18].mxu0  ;;  %3067 = vmatprep.mubr.bf16.mxu0 %v1408_v16  ;;  %3519 = vmatprep.mubr.bf16.mxu1 %v1408_v16  ;;  %v6158_v60 = vpack.c.bf16 %v1314_v14, %v1306_v6  ;;  %v990_v33 = vpop.f32.mrb[16].mxu1 }
 0x15e   : > { %v882_v53 = vadd.f32 %v881_v50, %v6088_v13  ;;  %v883_v48 = vpop.f32.mrb[19].mxu0  ;;  %3068 = vmatmul.mubr.bf16.gmra.mrb[76].mxu0 %v1407_v35  ;;  %3520 = vmatmul.mubr.bf16.gmra.mrb[76].mxu1 %v1407_v35  ;;  %v1319_v3 = vmax.f32 %v878_v43, 0.0  ;;  %v991_v37 = vadd.f32 %v990_v33, %v6104_v36  ;;  %v992_v16 = vpop.f32.mrb[17].mxu1 }
 0x15f   : > { %v884_v58 = vadd.f32 %v883_v48, %v6093_v21  ;;  %3131 = vmatpush1.bf16.msra.mxu0 %v5490_v40  ;;  %3583 = vmatpush1.bf16.msra.mxu1 %v5493_v41  ;;  %v1320_v8 = vmax.f32 %v880_v49, 0.0  ;;  %v5508_v41 = vld [vmem:[#allocation4 + $0x320] ss:$16 sps:$4 sm:$0xff]   ;;  %v993_v43 = vadd.f32 %v992_v16, %v6109_v38  ;;  %v994_v44 = vpop.f32.mrb[18].mxu1  ;;  %v5519_v48 = vld [vmem:[#allocation4 + $0x34c] ss:$16 sps:$4 sm:$0xff]  }
 0x160   : > { %v1327_v4 = vmax.f32 %v882_v53, 0.0  ;;  %3132 = vmatprep.subr.bf16.mxu0 %v5498_v45  ;;  %3584 = vmatprep.subr.bf16.mxu1 %v5501_v31  ;;  %v5511_v31 = vld [vmem:[#allocation4 + $0x328] ss:$16 sps:$4 sm:$0xff]   ;;  %v1321_v49 = vmax.f32 %v991_v37, 0.0  ;;  %v995_v50 = vadd.f32 %v994_v44, %v6104_v36  ;;  %v996_v51 = vpop.f32.mrb[19].mxu1 }
 0x161   : > { %v1328_v9 = vmax.f32 %v884_v58, 0.0  ;;  %v997_v55 = vadd.f32 %v996_v51, %v6109_v38 }
 0x162   : > { %v1415_v11 = vpack.c.bf16 %v1327_v4, %v1319_v3  ;;  %v5514_v3 = vld [vmem:[#allocation4 + $0x340] ss:$16 sps:$4 sm:$0xff]   ;;  %v5517_v4 = vld [vmem:[#allocation4 + $0x348] ss:$16 sps:$4 sm:$0xff]  }
 0x163   : > { %v1416_v17 = vpack.c.bf16 %v1328_v9, %v1320_v8  ;;  %3133 = vmatpush1.bf16.msra.mxu0 %v5496_v54  ;;  %v887_v12 = vpop.f32.mrb[20].mxu0  ;;  %3585 = vmatpush1.bf16.msra.mxu1 %v5499_v59  ;;  %v1322_v54 = vmax.f32 %v993_v43, 0.0  ;;  %v1329_v59 = vmax.f32 %v995_v50, 0.0  ;;  %v1330_v62 = vmax.f32 %v997_v55, 0.0  ;;  %v5522_v8 = vld [vmem:[#allocation4 + $0x364] ss:$16 sps:$4 sm:$0xff]  }
 0x164   : > { %v888_v26 = vadd.f32 %v887_v12, %v6088_v13  ;;  %v889_v28 = vpop.f32.mrb[21].mxu0  ;;  %3134 = vmatprep.subr.bf16.mxu0 %v5504_v61  ;;  %3586 = vmatprep.subr.bf16.mxu1 %v5507_v5  ;;  %v5525_v9 = vld [vmem:[#allocation4 + $0x36c] ss:$16 sps:$4 sm:$0xff]  }
 0x165   : > { %v890_v34 = vadd.f32 %v889_v28, %v6093_v21  ;;  %v891_v35 = vpop.f32.mrb[22].mxu0  ;;  %3077 = vmatprep.mubr.bf16.mxu0 %v1416_v17  ;;  %3529 = vmatprep.mubr.bf16.mxu1 %v1416_v17  ;;  %v6167_v5 = vpack.c.bf16 %v1329_v59, %v1321_v49  ;;  %v6170_v10 = vpack.c.bf16 %v1330_v62, %v1322_v54  ;;  %v5520_v28 = vld [vmem:[#allocation4 + $0x360] ss:$16 sps:$4 sm:$0xff]   ;;  %v5531_v43 = vld [vmem:[#allocation4 + $0x38c] ss:$16 sps:$4 sm:$0xff]  }
 0x166   : > { %v892_v39 = vadd.f32 %v891_v35, %v6088_v13  ;;  %v893_v40 = vpop.f32.mrb[23].mxu0  ;;  %3078 = vmatmul.mubr.bf16.gmra.mrb[80].mxu0 %v1415_v11  ;;  %3530 = vmatmul.mubr.bf16.gmra.mrb[80].mxu1 %v1415_v11  ;;  %v1335_v52 = vmax.f32 %v888_v26, 0.0  ;;  %v1000_v11 = vpop.f32.mrb[20].mxu1  ;;  %v5528_v35 = vld [vmem:[#allocation4 + $0x384] ss:$16 sps:$4 sm:$0xff]  }
 0x167   : > { %v894_v45 = vadd.f32 %v893_v40, %v6093_v21  ;;  %3135 = vmatpush1.bf16.msra.mxu0 %v5502_v22  ;;  %3587 = vmatpush1.bf16.msra.mxu1 %v5505_v23  ;;  %v1336_v56 = vmax.f32 %v890_v34, 0.0  ;;  %v1001_v12 = vadd.f32 %v1000_v11, %v6104_v36  ;;  %v1002_v22 = vpop.f32.mrb[21].mxu1  ;;  %v5523_v34 = vld [vmem:[#allocation4 + $0x368] ss:$16 sps:$4 sm:$0xff]   ;;  %v5537_v62 = vld [vmem:[#allocation4 + $0x3ac] ss:$16 sps:$4 sm:$0xff]  }
 0x168   : > { %v1343_v53 = vmax.f32 %v892_v39, 0.0  ;;  %3136 = vmatprep.subr.bf16.mxu0 %v5510_v29  ;;  %3588 = vmatprep.subr.bf16.mxu1 %v5513_v32  ;;  %v1003_v29 = vadd.f32 %v1002_v22, %v6109_v38  ;;  %v1004_v32 = vpop.f32.mrb[22].mxu1  ;;  %v5529_v54 = vld [vmem:[#allocation4 + $0x388] ss:$16 sps:$4 sm:$0xff]  }
 0x169   : > { %v1344_v58 = vmax.f32 %v894_v45, 0.0  ;;  %v1337_v37 = vmax.f32 %v1001_v12, 0.0  ;;  %v1005_v16 = vadd.f32 %v1004_v32, %v6104_v36  ;;  %v1006_v39 = vpop.f32.mrb[23].mxu1 }
 0x16a   : > { %v1423_v61 = vpack.c.bf16 %v1343_v53, %v1335_v52  ;;  %v1338_v44 = vmax.f32 %v1003_v29, 0.0  ;;  %v1007_v45 = vadd.f32 %v1006_v39, %v6109_v38 }
 0x16b   : > { %v1424_v1 = vpack.c.bf16 %v1344_v58, %v1336_v56  ;;  %3137 = vmatpush1.bf16.msra.mxu0 %v5508_v41  ;;  %v897_v2 = vpop.f32.mrb[24].mxu0  ;;  %3589 = vmatpush1.bf16.msra.mxu1 %v5511_v31  ;;  %v1345_v49 = vmax.f32 %v1005_v16, 0.0  ;;  %v413_v56 = vsub.s32 4, %v6076_v0 }
 0x16c   : > { %v898_v6 = vadd.f32 %v897_v2, %v6088_v13  ;;  %v899_v7 = vpop.f32.mrb[25].mxu0  ;;  %3138 = vmatprep.subr.bf16.mxu0 %v5516_v47  ;;  %3590 = vmatprep.subr.bf16.mxu1 %v5519_v48  ;;  %v1346_v51 = vmax.f32 %v1007_v45, 0.0  ;;  %v5526_v48 = vld [vmem:[#allocation4 + $0x380] ss:$16 sps:$4 sm:$0xff]  }
 0x16d   : > { %v900_v14 = vadd.f32 %v899_v7, %v6093_v21  ;;  %v901_v17 = vpop.f32.mrb[26].mxu0  ;;  %3087 = vmatprep.mubr.bf16.mxu0 %v1424_v1  ;;  %3539 = vmatprep.mubr.bf16.mxu1 %v1424_v1  ;;  %v6179_v55 = vpack.c.bf16 %v1345_v49, %v1337_v37  ;;  %v1010_v2 = vpop.f32.mrb[24].mxu1 }
 0x16e   : > { %v902_v23 = vadd.f32 %v901_v17, %v6088_v13  ;;  %v903_v26 = vpop.f32.mrb[27].mxu0  ;;  %3088 = vmatmul.mubr.bf16.gmra.mrb[84].mxu0 %v1423_v61  ;;  %3540 = vmatmul.mubr.bf16.gmra.mrb[84].mxu1 %v1423_v61  ;;  %v1351_v40 = vmax.f32 %v898_v6, 0.0  ;;  %v5534_v61 = vld [vmem:[#allocation4 + $0x3a4] ss:$16 sps:$4 sm:$0xff]   ;;  %v6183_v1 = vpack.c.bf16 %v1346_v51, %v1338_v44  ;;  %v1011_v6 = vadd.f32 %v1010_v2, %v6104_v36  ;;  %v1012_v7 = vpop.f32.mrb[25].mxu1 }
 0x16f   : > { %v904_v33 = vadd.f32 %v903_v26, %v6093_v21  ;;  %3139 = vmatpush1.bf16.msra.mxu0 %v5514_v3  ;;  %3591 = vmatpush1.bf16.msra.mxu1 %v5517_v4  ;;  %v1352_v31 = vmax.f32 %v900_v14, 0.0  ;;  %v5532_v14 = vld [vmem:[#allocation4 + $0x3a0] ss:$16 sps:$4 sm:$0xff]   ;;  %v1013_v17 = vadd.f32 %v1012_v7, %v6109_v38  ;;  %v1014_v12 = vpop.f32.mrb[26].mxu1  ;;  %v5540_v26 = vld [vmem:[#allocation4 + $0x3c4] ss:$16 sps:$4 sm:$0xff]  }
 0x170   : > { %v1359_v41 = vmax.f32 %v902_v23, 0.0  ;;  %3140 = vmatprep.subr.bf16.mxu0 %v5522_v8  ;;  %3592 = vmatprep.subr.bf16.mxu1 %v5525_v9  ;;  %v417_v8 = vsub.s32 5, %v6076_v0  ;;  %v5535_v23 = vld [vmem:[#allocation4 + $0x3a8] ss:$16 sps:$4 sm:$0xff]   ;;  %v1015_v29 = vadd.f32 %v1014_v12, %v6104_v36  ;;  %v1016_v32 = vpop.f32.mrb[27].mxu1  ;;  %v421_v2 = vsub.s32 6, %v6076_v0 }
 0x171   : > { %v1360_v47 = vmax.f32 %v904_v33, 0.0  ;;  %v6193_v33 = vrot.slane %v6082_v19, %v413_v56  ;;  %v1354_v37 = vmax.f32 %v1013_v17, 0.0  ;;  %v1017_v16 = vadd.f32 %v1016_v32, %v6109_v38  ;;  %v5546_v51 = vld [vmem:[#allocation4 + $0x3e4] ss:$16 sps:$4 sm:$0xff]   ;;  %v5549_v56 = vld [vmem:[#allocation4 + $0x3ec] ss:$16 sps:$4 sm:$0xff]  }
 0x172   : > { %v1431_v50 = vpack.c.bf16 %v1359_v41, %v1351_v40  ;;  %v1361_v40 = vmax.f32 %v1015_v29, 0.0  ;;  %v6197_v41 = vrot.slane %v6082_v19, %v417_v8  ;;  %v5555_v29 = vld [vmem:[#allocation4 + $0x40c] ss:$16 sps:$4 sm:$0xff]  }
 0x173   : > { %v1432_v52 = vpack.c.bf16 %v1360_v47, %v1352_v31  ;;  %3141 = vmatpush1.bf16.msra.mxu0 %v5520_v28  ;;  %v907_v53 = vpop.f32.mrb[28].mxu0  ;;  %3593 = vmatpush1.bf16.msra.mxu1 %v5523_v34  ;;  %v1353_v28 = vmax.f32 %v1011_v6, 0.0  ;;  %v1362_v44 = vmax.f32 %v1017_v16, 0.0  ;;  %v5538_v31 = vld [vmem:[#allocation4 + $0x3c0] ss:$16 sps:$4 sm:$0xff]  }
 0x174   : > { %v908_v58 = vadd.f32 %v907_v53, %v6088_v13  ;;  %v909_v59 = vpop.f32.mrb[29].mxu0  ;;  %3142 = vmatprep.subr.bf16.mxu0 %v5528_v35  ;;  %3594 = vmatprep.subr.bf16.mxu1 %v5531_v43  ;;  %v5543_v35 = vld [vmem:[#allocation4 + $0x3cc] ss:$16 sps:$4 sm:$0xff]   ;;  %v5541_v47 = vld [vmem:[#allocation4 + $0x3c8] ss:$16 sps:$4 sm:$0xff]  }
 0x175   : > { %v910_v3 = vadd.f32 %v909_v59, %v6093_v21  ;;  %v911_v4 = vpop.f32.mrb[30].mxu0  ;;  %3097 = vmatprep.mubr.bf16.mxu0 %v1432_v52  ;;  %3549 = vmatprep.mubr.bf16.mxu1 %v1432_v52  ;;  %v6199_v49 = vpack.c.bf16 %v1361_v40, %v1353_v28  ;;  %v6201_v52 = vpack.c.bf16 %v1362_v44, %v1354_v37  ;;  %v1020_v53 = vpop.f32.mrb[28].mxu1  ;;  %v5552_v28 = vld [vmem:[#allocation4 + $0x404] ss:$16 sps:$4 sm:$0xff]   ;;  %v5550_v40 = vld [vmem:[#allocation4 + $0x400] ss:$16 sps:$4 sm:$0xff]  }
 0x176   : > { %v912_v9 = vadd.f32 %v911_v4, %v6088_v13  ;;  %v913_v11 = vpop.f32.mrb[31].mxu0  ;;  %3098 = vmatmul.mubr.bf16.gmra.mrb[88].mxu0 %v1431_v50  ;;  %3550 = vmatmul.mubr.bf16.gmra.mrb[88].mxu1 %v1431_v50  ;;  %v1367_v13 = vmax.f32 %v908_v58, 0.0  ;;  %v1021_v58 = vadd.f32 %v1020_v53, %v6104_v36  ;;  %v1022_v59 = vpop.f32.mrb[29].mxu1 }
 0x177   : > { %v914_v22 = vadd.f32 %v913_v11, %v6093_v21  ;;  %3143 = vmatpush1.bf16.msra.mxu0 %v5526_v48  ;;  %3595 = vmatpush1.bf16.msra.mxu1 %v5529_v54  ;;  %v1368_v21 = vmax.f32 %v910_v3, 0.0  ;;  %v5544_v3 = vld [vmem:[#allocation4 + $0x3e0] ss:$16 sps:$4 sm:$0xff]   ;;  %v1023_v4 = vadd.f32 %v1022_v59, %v6109_v38  ;;  %v1024_v6 = vpop.f32.mrb[30].mxu1  ;;  %v425_v11 = vsub.s32 7, %v6076_v0 }
 0x178   : > { %v1375_v34 = vmax.f32 %v912_v9, 0.0  ;;  %3144 = vmatprep.subr.bf16.mxu0 %v5534_v61  ;;  %3596 = vmatprep.subr.bf16.mxu1 %v5537_v62  ;;  %v1369_v17 = vmax.f32 %v1021_v58, 0.0  ;;  %v1025_v12 = vadd.f32 %v1024_v6, %v6104_v36  ;;  %v6216_v36 = vrot.slane %v6082_v19, %v421_v2  ;;  %v5556_v58 = vld [vmem:[#allocation4 + $0x420] ss:$16 sps:$4 sm:$0xff]  }
 0x179   : > { %v1376_v39 = vmax.f32 %v914_v22, 0.0  ;;  %v1026_v22 = vpop.f32.mrb[31].mxu1  ;;  %v1370_v32 = vmax.f32 %v1023_v4, 0.0  ;;  %v5559_v4 = vld [vmem:[#allocation4 + $0x428] ss:$16 sps:$4 sm:$0xff]  }
 0x17a   : > { %v1439_v43 = vpack.c.bf16 %v1375_v34, %v1367_v13  ;;  %v1027_v13 = vadd.f32 %v1026_v22, %v6109_v38 }
 0x17b   : > { %v1440_v45 = vpack.c.bf16 %v1376_v39, %v1368_v21  ;;  %3145 = vmatpush1.bf16.msra.mxu0 %v5532_v14  ;;  %3597 = vmatpush1.bf16.msra.mxu1 %v5535_v23  ;;  %v1063_v50 = vpop.f32.mrb[32].mxu0  ;;  %v5547_v14 = vld [vmem:[#allocation4 + $0x3e8] ss:$16 sps:$4 sm:$0xff]   ;;  %v6221_v39 = vrot.slane %v6082_v19, %v425_v11  ;;  %v5561_v19 = vld [vmem:[#allocation4 + $0x42c] ss:$16 sps:$4 sm:$0xff]  }
 0x17c   : > { %3146 = vmatprep.subr.bf16.mxu0 %v5540_v26  ;;  %3598 = vmatprep.subr.bf16.mxu1 %v5543_v35  ;;  %v1064_v48 = vadd.f32 %v1063_v50, %v6193_v33  ;;  %v1065_v54 = vpop.f32.mrb[33].mxu0  ;;  %v1377_v35 = vmax.f32 %v1025_v12, 0.0  ;;  %v1378_v16 = vmax.f32 %v1027_v13, 0.0  ;;  %v5565_v13 = vld [vmem:[#allocation4 + $0x448] ss:$16 sps:$4 sm:$0xff]  }
 0x17d   : > { %3107 = vmatprep.mubr.bf16.mxu0 %v1440_v45  ;;  %3559 = vmatprep.mubr.bf16.mxu1 %v1440_v45  ;;  %v1066_v61 = vadd.f32 %v1065_v54, %v6197_v41  ;;  %v1067_v62 = vpop.f32.mrb[34].mxu0  ;;  %v5558_v45 = vld [vmem:[#allocation4 + $0x424] ss:$16 sps:$4 sm:$0xff]  }
 0x17e   : > { %3108 = vmatmul.mubr.bf16.gmra.mrb[92].mxu0 %v1439_v43  ;;  %3560 = vmatmul.mubr.bf16.gmra.mrb[92].mxu1 %v1439_v43  ;;  %v1259_v7 = vmax.f32 %v1064_v48, 0.0  ;;  %v1068_v8 = vadd.f32 %v1067_v62, %v6193_v33  ;;  %v1069_v9 = vpop.f32.mrb[35].mxu0  ;;  %v5553_v43 = vld [vmem:[#allocation4 + $0x408] ss:$16 sps:$4 sm:$0xff]   ;;  %v6223_v38 = vpack.c.bf16 %v1377_v35, %v1369_v17 }
 0x17f   : > { %3147 = vmatpush1.bf16.msra.mxu0 %v5538_v31  ;;  %3599 = vmatpush1.bf16.msra.mxu1 %v5541_v47  ;;  %v1260_v23 = vmax.f32 %v1066_v61, 0.0  ;;  %v1070_v26 = vadd.f32 %v1069_v9, %v6197_v41  ;;  %v6227_v31 = vpack.c.bf16 %v1378_v16, %v1370_v32  ;;  %v5562_v32 = vld [vmem:[#allocation4 + $0x440] ss:$16 sps:$4 sm:$0xff]   ;;  %v5570_v16 = vld [vmem:[#allocation4 + $0x464] ss:$16 sps:$4 sm:$0xff]  }
 0x180   : > { %3148 = vmatprep.subr.bf16.mxu0 %v5546_v51  ;;  %3150 = vmatprep.mubr.bf16.mxu0 %v6122_v24  ;;  %v1267_v34 = vmax.f32 %v1068_v8, 0.0  ;;  %v1176_v51 = vpop.f32.mrb[32].mxu1 }
 0x181   : > { %3600 = vmatprep.subr.bf16.mxu1 %v5549_v56  ;;  %3602 = vmatprep.mubr.bf16.mxu1 %v6122_v24  ;;  %v1268_v37 = vmax.f32 %v1070_v26, 0.0  ;;  %v1177_v54 = vadd.f32 %v1176_v51, %v6216_v36  ;;  %v1178_v56 = vpop.f32.mrb[33].mxu1 }
 0x182   : > { %v6218_v21 = vpack.c.bf16 %v1267_v34, %v1259_v7  ;;  %v1179_v2 = vadd.f32 %v1178_v56, %v6221_v39 }
 0x183   : > { %3149 = vmatpush1.bf16.msra.mxu0 %v5544_v3  ;;  %3601 = vmatpush1.bf16.msra.mxu1 %v5547_v14  ;;  %v6225_v44 = vpack.c.bf16 %v1268_v37, %v1260_v23  ;;  %v1073_v24 = vpop.f32.mrb[36].mxu0  ;;  %v1180_v3 = vpop.f32.mrb[34].mxu1  ;;  %v1261_v8 = vmax.f32 %v1177_v54, 0.0  ;;  %v5567_v14 = vld [vmem:[#allocation4 + $0x44c] ss:$16 sps:$4 sm:$0xff]  }
 0x184   : > { %3231 = vmatprep.subr.bf16.mxu0 %v5552_v28  ;;  %3683 = vmatprep.subr.bf16.mxu1 %v5555_v29  ;;  %v1074_v47 = vadd.f32 %v1073_v24, %v6193_v33  ;;  %v1075_v50 = vpop.f32.mrb[37].mxu0  ;;  %v1181_v9 = vadd.f32 %v1180_v3, %v6216_v36  ;;  %v1182_v11 = vpop.f32.mrb[35].mxu1  ;;  %v1262_v12 = vmax.f32 %v1179_v2, 0.0 }
 0x185   : > { %v1076_v53 = vadd.f32 %v1075_v50, %v6197_v41  ;;  %v1077_v48 = vpop.f32.mrb[38].mxu0  ;;  %v1183_v22 = vadd.f32 %v1182_v11, %v6221_v39  ;;  %v1186_v24 = vpop.f32.mrb[36].mxu1 }
 0x186   : > { %3151 = vmatmul.mubr.bf16.vlgmr.msra.gmra.mrb[64].mxu0 %v6119_v15  ;;  %3603 = vmatmul.mubr.bf16.vlgmr.msra.gmra.mrb[64].mxu1 %v6119_v15  ;;  %v1275_v59 = vmax.f32 %v1074_v47, 0.0  ;;  %v1078_v61 = vadd.f32 %v1077_v48, %v6193_v33  ;;  %v1079_v62 = vpop.f32.mrb[39].mxu0  ;;  %v5564_v15 = vld [vmem:[#allocation4 + $0x444] ss:$16 sps:$4 sm:$0xff]   ;;  %v1269_v26 = vmax.f32 %v1181_v9, 0.0  ;;  %v1187_v51 = vadd.f32 %v1186_v24, %v6216_v36 }
 0x187   : > { %3232 = vmatpush1.bf16.msra.mxu0 %v5550_v40  ;;  %3684 = vmatpush1.bf16.msra.mxu1 %v5553_v43  ;;  %v1276_v6 = vmax.f32 %v1076_v53, 0.0  ;;  %v1080_v7 = vadd.f32 %v1079_v62, %v6197_v41  ;;  %v1270_v29 = vmax.f32 %v1183_v22, 0.0  ;;  %v5568_v53 = vld [vmem:[#allocation4 + $0x460] ss:$16 sps:$4 sm:$0xff]  }
 0x188   : > { %3233 = vmatprep.subr.bf16.mxu0 %v5558_v45  ;;  %3160 = vmatprep.mubr.bf16.mxu0 %v6134_v63  ;;  %v1283_v17 = vmax.f32 %v1078_v61, 0.0  ;;  %v6245_v37 = vpack.c.bf16 %v1269_v26, %v1261_v8  ;;  %v5573_v45 = vld [vmem:[#allocation4 + $0x46c] ss:$16 sps:$4 sm:$0xff]   ;;  %v5571_v61 = vld [vmem:[#allocation4 + $0x468] ss:$16 sps:$4 sm:$0xff]   ;;  %v1277_v3 = vmax.f32 %v1187_v51, 0.0 }
 0x189   : > { %3612 = vmatprep.mubr.bf16.mxu1 %v6134_v63  ;;  %3685 = vmatprep.subr.bf16.mxu1 %v5561_v19  ;;  %v1284_v23 = vmax.f32 %v1080_v7, 0.0  ;;  %v6248_v43 = vpack.c.bf16 %v1270_v29, %v1262_v12  ;;  %v1188_v19 = vpop.f32.mrb[37].mxu1  ;;  %v5579_v7 = vld [vmem:[#allocation4 + $0x48c] ss:$16 sps:$4 sm:$0xff]   ;;  %v5574_v22 = vld [vmem:[#allocation4 + $0x480] ss:$16 sps:$4 sm:$0xff]  }
 0x18a   : > { %v6241_v28 = vpack.c.bf16 %v1283_v17, %v1275_v59  ;;  %v1190_v59 = vpop.f32.mrb[38].mxu1  ;;  %v5580_v51 = vld [vmem:[#allocation4 + $0x4a0] ss:$16 sps:$4 sm:$0xff]  }
 0x18b   : > { %3234 = vmatpush1.bf16.msra.mxu0 %v5556_v58  ;;  %3686 = vmatpush1.bf16.msra.mxu1 %v5559_v4  ;;  %v6243_v34 = vpack.c.bf16 %v1284_v23, %v1276_v6  ;;  %v1083_v35 = vpop.f32.mrb[40].mxu0  ;;  %v1189_v58 = vadd.f32 %v1188_v19, %v6221_v39  ;;  %v1191_v4 = vadd.f32 %v1190_v59, %v6216_v36  ;;  %v1192_v6 = vpop.f32.mrb[39].mxu1  ;;  %v5577_v23 = vld [vmem:[#allocation4 + $0x488] ss:$16 sps:$4 sm:$0xff]  }
 0x18c   : > { %3235 = vmatprep.subr.bf16.mxu0 %v5564_v15  ;;  %3687 = vmatprep.subr.bf16.mxu1 %v5567_v14  ;;  %v1084_v63 = vadd.f32 %v1083_v35, %v6193_v33  ;;  %v1085_v40 = vpop.f32.mrb[41].mxu0  ;;  %v1193_v11 = vadd.f32 %v1192_v6, %v6221_v39 }
 0x18d   : > { %v1086_v47 = vadd.f32 %v1085_v40, %v6197_v41  ;;  %v1087_v50 = vpop.f32.mrb[42].mxu0  ;;  %v1278_v9 = vmax.f32 %v1189_v58, 0.0  ;;  %v1285_v14 = vmax.f32 %v1191_v4, 0.0  ;;  %v5585_v40 = vld [vmem:[#allocation4 + $0x4ac] ss:$16 sps:$4 sm:$0xff]  }
 0x18e   : > { %3161 = vmatmul.mubr.bf16.gmra.mrb[68].mxu0 %v6131_v57  ;;  %3613 = vmatmul.mubr.bf16.gmra.mrb[68].mxu1 %v6131_v57  ;;  %v1291_v48 = vmax.f32 %v1084_v63, 0.0  ;;  %v1088_v54 = vadd.f32 %v1087_v50, %v6193_v33  ;;  %v1089_v56 = vpop.f32.mrb[43].mxu0  ;;  %v5576_v57 = vld [vmem:[#allocation4 + $0x484] ss:$16 sps:$4 sm:$0xff]   ;;  %v1286_v12 = vmax.f32 %v1193_v11, 0.0  ;;  %v1196_v63 = vpop.f32.mrb[40].mxu1 }
 0x18f   : > { %3236 = vmatpush1.bf16.msra.mxu0 %v5562_v32  ;;  %3688 = vmatpush1.bf16.msra.mxu1 %v5565_v13  ;;  %v1292_v62 = vmax.f32 %v1086_v47, 0.0  ;;  %v1090_v2 = vadd.f32 %v1089_v56, %v6197_v41  ;;  %v6265_v32 = vpack.c.bf16 %v1285_v14, %v1277_v3  ;;  %v5582_v13 = vld [vmem:[#allocation4 + $0x4a4] ss:$16 sps:$4 sm:$0xff]   ;;  %v1197_v47 = vadd.f32 %v1196_v63, %v6216_v36  ;;  %v1198_v50 = vpop.f32.mrb[41].mxu1  ;;  %v5583_v58 = vld [vmem:[#allocation4 + $0x4a8] ss:$16 sps:$4 sm:$0xff]  }
 0x190   : > { %3237 = vmatprep.subr.bf16.mxu0 %v5570_v16  ;;  %3170 = vmatprep.mubr.bf16.mxu0 %v6146_v46  ;;  %v1299_v8 = vmax.f32 %v1088_v54, 0.0  ;;  %v6268_v16 = vpack.c.bf16 %v1286_v12, %v1278_v9  ;;  %v1199_v54 = vadd.f32 %v1198_v50, %v6221_v39  ;;  %v1200_v56 = vpop.f32.mrb[42].mxu1  ;;  %v5591_v4 = vld [vmem:[#allocation4 + $0x4cc] ss:$16 sps:$4 sm:$0xff]   ;;  %v5586_v14 = vld [vmem:[#allocation4 + $0x4c0] ss:$16 sps:$4 sm:$0xff]  }
 0x191   : > { %3622 = vmatprep.mubr.bf16.mxu1 %v6146_v46  ;;  %3689 = vmatprep.subr.bf16.mxu1 %v5573_v45  ;;  %v1300_v15 = vmax.f32 %v1090_v2, 0.0  ;;  %v1201_v2 = vadd.f32 %v1200_v56, %v6216_v36  ;;  %v1202_v3 = vpop.f32.mrb[43].mxu1  ;;  %v5589_v12 = vld [vmem:[#allocation4 + $0x4c8] ss:$16 sps:$4 sm:$0xff]  }
 0x192   : > { %v6261_v17 = vpack.c.bf16 %v1299_v8, %v1291_v48 }
 0x193   : > { %3238 = vmatpush1.bf16.msra.mxu0 %v5568_v53  ;;  %3690 = vmatpush1.bf16.msra.mxu1 %v5571_v61  ;;  %v6263_v26 = vpack.c.bf16 %v1300_v15, %v1292_v62  ;;  %v1093_v29 = vpop.f32.mrb[44].mxu0  ;;  %v1293_v62 = vmax.f32 %v1197_v47, 0.0  ;;  %v1301_v9 = vmax.f32 %v1201_v2, 0.0 }
 0x194   : > { %3239 = vmatprep.subr.bf16.mxu0 %v5576_v57  ;;  %3691 = vmatprep.subr.bf16.mxu1 %v5579_v7  ;;  %v1094_v46 = vadd.f32 %v1093_v29, %v6193_v33  ;;  %v1095_v35 = vpop.f32.mrb[45].mxu0  ;;  %v1294_v57 = vmax.f32 %v1199_v54, 0.0  ;;  %v1203_v7 = vadd.f32 %v1202_v3, %v6221_v39 }
 0x195   : > { %v1096_v24 = vadd.f32 %v1095_v35, %v6197_v41  ;;  %v1097_v45 = vpop.f32.mrb[46].mxu0  ;;  %v6285_v29 = vpack.c.bf16 %v1301_v9, %v1293_v62  ;;  %v1206_v63 = vpop.f32.mrb[44].mxu1 }
 0x196   : > { %3171 = vmatmul.mubr.bf16.gmra.mrb[72].mxu0 %v6143_v42  ;;  %3623 = vmatmul.mubr.bf16.gmra.mrb[72].mxu1 %v6143_v42  ;;  %v1307_v19 = vmax.f32 %v1094_v46, 0.0  ;;  %v1098_v53 = vadd.f32 %v1097_v45, %v6193_v33  ;;  %v1099_v48 = vpop.f32.mrb[47].mxu0  ;;  %v5588_v42 = vld [vmem:[#allocation4 + $0x4c4] ss:$16 sps:$4 sm:$0xff]   ;;  %v1302_v15 = vmax.f32 %v1203_v7, 0.0  ;;  %v1207_v47 = vadd.f32 %v1206_v63, %v6216_v36  ;;  %v1208_v50 = vpop.f32.mrb[45].mxu1 }
 0x197   : > { %3240 = vmatpush1.bf16.msra.mxu0 %v5574_v22  ;;  %3692 = vmatpush1.bf16.msra.mxu1 %v5577_v23  ;;  %v1308_v59 = vmax.f32 %v1096_v24, 0.0  ;;  %v1100_v61 = vadd.f32 %v1099_v48, %v6197_v41  ;;  %v1209_v54 = vadd.f32 %v1208_v50, %v6221_v39  ;;  %v1210_v56 = vpop.f32.mrb[46].mxu1 }
 0x198   : > { %3241 = vmatprep.subr.bf16.mxu0 %v5582_v13  ;;  %3180 = vmatprep.mubr.bf16.mxu0 %v6158_v60  ;;  %v1315_v6 = vmax.f32 %v1098_v53, 0.0  ;;  %v5594_v13 = vld [vmem:[#allocation4 + $0x4e4] ss:$16 sps:$4 sm:$0xff]   ;;  %v6288_v35 = vpack.c.bf16 %v1302_v15, %v1294_v57  ;;  %v1309_v62 = vmax.f32 %v1207_v47, 0.0  ;;  %v1211_v2 = vadd.f32 %v1210_v56, %v6216_v36  ;;  %v1212_v3 = vpop.f32.mrb[47].mxu1 }
 0x199   : > { %3632 = vmatprep.mubr.bf16.mxu1 %v6158_v60  ;;  %3693 = vmatprep.subr.bf16.mxu1 %v5585_v40  ;;  %v1316_v8 = vmax.f32 %v1100_v61, 0.0  ;;  %v5597_v40 = vld [vmem:[#allocation4 + $0x4ec] ss:$16 sps:$4 sm:$0xff]   ;;  %v1213_v57 = vadd.f32 %v1212_v3, %v6221_v39 }
 0x19a   : > { %v6281_v11 = vpack.c.bf16 %v1315_v6, %v1307_v19  ;;  %v1310_v6 = vmax.f32 %v1209_v54, 0.0 }
 0x19b   : > { %3242 = vmatpush1.bf16.msra.mxu0 %v5580_v51  ;;  %3694 = vmatpush1.bf16.msra.mxu1 %v5583_v58  ;;  %v6283_v22 = vpack.c.bf16 %v1316_v8, %v1308_v59  ;;  %v1103_v23 = vpop.f32.mrb[48].mxu0  ;;  %v5592_v51 = vld [vmem:[#allocation4 + $0x4e0] ss:$16 sps:$4 sm:$0xff]   ;;  %v5595_v58 = vld [vmem:[#allocation4 + $0x4e8] ss:$16 sps:$4 sm:$0xff]   ;;  %v1317_v8 = vmax.f32 %v1211_v2, 0.0 }
 0x19c   : > { %3243 = vmatprep.subr.bf16.mxu0 %v5588_v42  ;;  %3695 = vmatprep.subr.bf16.mxu1 %v5591_v4  ;;  %v1104_v60 = vadd.f32 %v1103_v23, %v6193_v33  ;;  %v1105_v46 = vpop.f32.mrb[49].mxu0  ;;  %v5603_v42 = vld [vmem:[#allocation4 + $0x50c] ss:$16 sps:$4 sm:$0xff]   ;;  %v1318_v15 = vmax.f32 %v1213_v57, 0.0 }
 0x19d   : > { %v1106_v24 = vadd.f32 %v1105_v46, %v6197_v41  ;;  %v1107_v45 = vpop.f32.mrb[50].mxu0  ;;  %v5606_v46 = vld [vmem:[#allocation4 + $0x524] ss:$16 sps:$4 sm:$0xff]  }
 0x19e   : > { %3181 = vmatmul.mubr.bf16.gmra.mrb[76].mxu0 %v6155_v25  ;;  %3633 = vmatmul.mubr.bf16.gmra.mrb[76].mxu1 %v6155_v25  ;;  %v1323_v19 = vmax.f32 %v1104_v60, 0.0  ;;  %v1108_v53 = vadd.f32 %v1107_v45, %v6193_v33  ;;  %v1109_v48 = vpop.f32.mrb[51].mxu0  ;;  %v5600_v25 = vld [vmem:[#allocation4 + $0x504] ss:$16 sps:$4 sm:$0xff]   ;;  %v6305_v60 = vpack.c.bf16 %v1317_v8, %v1309_v62  ;;  %v5609_v45 = vld [vmem:[#allocation4 + $0x52c] ss:$16 sps:$4 sm:$0xff]  }
 0x19f   : > { %3244 = vmatpush1.bf16.msra.mxu0 %v5586_v14  ;;  %3696 = vmatpush1.bf16.msra.mxu1 %v5589_v12  ;;  %v1324_v59 = vmax.f32 %v1106_v24, 0.0  ;;  %v1110_v61 = vadd.f32 %v1109_v48, %v6197_v41  ;;  %v5598_v14 = vld [vmem:[#allocation4 + $0x500] ss:$16 sps:$4 sm:$0xff]   ;;  %v5601_v12 = vld [vmem:[#allocation4 + $0x508] ss:$16 sps:$4 sm:$0xff]   ;;  %v1216_v24 = vpop.f32.mrb[48].mxu1 }
 0x1a0   : > { %3245 = vmatprep.subr.bf16.mxu0 %v5594_v13  ;;  %3190 = vmatprep.mubr.bf16.mxu0 %v6170_v10  ;;  %v1331_v4 = vmax.f32 %v1108_v53, 0.0  ;;  %v5604_v53 = vld [vmem:[#allocation4 + $0x520] ss:$16 sps:$4 sm:$0xff]  }
 0x1a1   : > { %3642 = vmatprep.mubr.bf16.mxu1 %v6170_v10  ;;  %3697 = vmatprep.subr.bf16.mxu1 %v5597_v40  ;;  %v1332_v7 = vmax.f32 %v1110_v61, 0.0  ;;  %v6308_v40 = vpack.c.bf16 %v1318_v15, %v1310_v6  ;;  %v5607_v61 = vld [vmem:[#allocation4 + $0x528] ss:$16 sps:$4 sm:$0xff]  }
 0x1a2   : > { %v6301_v9 = vpack.c.bf16 %v1331_v4, %v1323_v19  ;;  %v1218_v19 = vpop.f32.mrb[49].mxu1  ;;  %v5615_v4 = vld [vmem:[#allocation4 + $0x54c] ss:$16 sps:$4 sm:$0xff]  }
 0x1a3   : > { %3246 = vmatpush1.bf16.msra.mxu0 %v5592_v51  ;;  %3698 = vmatpush1.bf16.msra.mxu1 %v5595_v58  ;;  %v6303_v23 = vpack.c.bf16 %v1332_v7, %v1324_v59  ;;  %v1113_v13 = vpop.f32.mrb[52].mxu0  ;;  %v1217_v51 = vadd.f32 %v1216_v24, %v6216_v36  ;;  %v1219_v58 = vadd.f32 %v1218_v19, %v6221_v39  ;;  %v1220_v59 = vpop.f32.mrb[50].mxu1  ;;  %v5621_v19 = vld [vmem:[#allocation4 + $0x56c] ss:$16 sps:$4 sm:$0xff]  }
 0x1a4   : > { %3247 = vmatprep.subr.bf16.mxu0 %v5600_v25  ;;  %3699 = vmatprep.subr.bf16.mxu1 %v5603_v42  ;;  %v1114_v10 = vadd.f32 %v1113_v13, %v6193_v33  ;;  %v1115_v63 = vpop.f32.mrb[53].mxu0  ;;  %v1221_v25 = vadd.f32 %v1220_v59, %v6216_v36  ;;  %v1222_v42 = vpop.f32.mrb[51].mxu1  ;;  %v5610_v13 = vld [vmem:[#allocation4 + $0x540] ss:$16 sps:$4 sm:$0xff]  }
 0x1a5   : > { %v1116_v47 = vadd.f32 %v1115_v63, %v6197_v41  ;;  %v1117_v50 = vpop.f32.mrb[54].mxu0  ;;  %v1325_v3 = vmax.f32 %v1217_v51, 0.0  ;;  %v1326_v57 = vmax.f32 %v1219_v58, 0.0  ;;  %v1223_v7 = vadd.f32 %v1222_v42, %v6221_v39  ;;  %v1226_v51 = vpop.f32.mrb[52].mxu1  ;;  %v5616_v58 = vld [vmem:[#allocation4 + $0x560] ss:$16 sps:$4 sm:$0xff]  }
 0x1a6   : > { %3191 = vmatmul.mubr.bf16.gmra.mrb[80].mxu0 %v6167_v5  ;;  %3643 = vmatmul.mubr.bf16.gmra.mrb[80].mxu1 %v6167_v5  ;;  %v1339_v48 = vmax.f32 %v1114_v10, 0.0  ;;  %v1118_v54 = vadd.f32 %v1117_v50, %v6193_v33  ;;  %v1119_v56 = vpop.f32.mrb[55].mxu0  ;;  %v5612_v5 = vld [vmem:[#allocation4 + $0x544] ss:$16 sps:$4 sm:$0xff]   ;;  %v1333_v15 = vmax.f32 %v1221_v25, 0.0 }
 0x1a7   : > { %3248 = vmatpush1.bf16.msra.mxu0 %v5598_v14  ;;  %3700 = vmatpush1.bf16.msra.mxu1 %v5601_v12  ;;  %v1340_v62 = vmax.f32 %v1116_v47, 0.0  ;;  %v1120_v2 = vadd.f32 %v1119_v56, %v6197_v41  ;;  %v1334_v12 = vmax.f32 %v1223_v7, 0.0  ;;  %v5618_v47 = vld [vmem:[#allocation4 + $0x564] ss:$16 sps:$4 sm:$0xff]   ;;  %v1228_v56 = vpop.f32.mrb[53].mxu1 }
 0x1a8   : > { %3249 = vmatprep.subr.bf16.mxu0 %v5606_v46  ;;  %3200 = vmatprep.mubr.bf16.mxu0 %v6183_v1  ;;  %v1347_v6 = vmax.f32 %v1118_v54, 0.0  ;;  %v5613_v46 = vld [vmem:[#allocation4 + $0x548] ss:$16 sps:$4 sm:$0xff]   ;;  %v6325_v24 = vpack.c.bf16 %v1333_v15, %v1325_v3  ;;  %v1227_v54 = vadd.f32 %v1226_v51, %v6216_v36  ;;  %v1230_v3 = vpop.f32.mrb[54].mxu1  ;;  %v5627_v7 = vld [vmem:[#allocation4 + $0x58c] ss:$16 sps:$4 sm:$0xff]  }
 0x1a9   : > { %3652 = vmatprep.mubr.bf16.mxu1 %v6183_v1  ;;  %3701 = vmatprep.subr.bf16.mxu1 %v5609_v45  ;;  %v1348_v8 = vmax.f32 %v1120_v2, 0.0  ;;  %v6328_v50 = vpack.c.bf16 %v1334_v12, %v1326_v57  ;;  %v1229_v2 = vadd.f32 %v1228_v56, %v6221_v39  ;;  %v5619_v25 = vld [vmem:[#allocation4 + $0x568] ss:$16 sps:$4 sm:$0xff]   ;;  %v1232_v57 = vpop.f32.mrb[55].mxu1 }
 0x1aa   : > { %v6321_v14 = vpack.c.bf16 %v1347_v6, %v1339_v48  ;;  %v1231_v6 = vadd.f32 %v1230_v3, %v6216_v36  ;;  %v1233_v12 = vadd.f32 %v1232_v57, %v6221_v39 }
 0x1ab   : > { %3250 = vmatpush1.bf16.msra.mxu0 %v5604_v53  ;;  %3702 = vmatpush1.bf16.msra.mxu1 %v5607_v61  ;;  %v6323_v10 = vpack.c.bf16 %v1348_v8, %v1340_v62  ;;  %v1123_v63 = vpop.f32.mrb[56].mxu0  ;;  %v1342_v15 = vmax.f32 %v1229_v2, 0.0 }
 0x1ac   : > { %3251 = vmatprep.subr.bf16.mxu0 %v5612_v5  ;;  %3703 = vmatprep.subr.bf16.mxu1 %v5615_v4  ;;  %v1124_v1 = vadd.f32 %v1123_v63, %v6193_v33  ;;  %v1125_v45 = vpop.f32.mrb[57].mxu0  ;;  %v1341_v4 = vmax.f32 %v1227_v54, 0.0  ;;  %v5630_v54 = vld [vmem:[#allocation4 + $0x5a4] ss:$16 sps:$4 sm:$0xff]  }
 0x1ad   : > { %v1126_v53 = vadd.f32 %v1125_v45, %v6197_v41  ;;  %v1127_v48 = vpop.f32.mrb[58].mxu0  ;;  %v5622_v45 = vld [vmem:[#allocation4 + $0x580] ss:$16 sps:$4 sm:$0xff]  }
 0x1ae   : > { %3201 = vmatmul.mubr.bf16.gmra.mrb[84].mxu0 %v6179_v55  ;;  %3653 = vmatmul.mubr.bf16.gmra.mrb[84].mxu1 %v6179_v55  ;;  %v1355_v59 = vmax.f32 %v1124_v1, 0.0  ;;  %v1128_v61 = vadd.f32 %v1127_v48, %v6193_v33  ;;  %v1129_v62 = vpop.f32.mrb[59].mxu0  ;;  %v5624_v55 = vld [vmem:[#allocation4 + $0x584] ss:$16 sps:$4 sm:$0xff]   ;;  %v1350_v1 = vmax.f32 %v1233_v12, 0.0 }
 0x1af   : > { %3252 = vmatpush1.bf16.msra.mxu0 %v5610_v13  ;;  %3704 = vmatpush1.bf16.msra.mxu1 %v5613_v46  ;;  %v1356_v42 = vmax.f32 %v1126_v53, 0.0  ;;  %v1130_v5 = vadd.f32 %v1129_v62, %v6197_v41  ;;  %v1349_v46 = vmax.f32 %v1231_v6, 0.0 }
 0x1b0   : > { %3253 = vmatprep.subr.bf16.mxu0 %v5618_v47  ;;  %3210 = vmatprep.mubr.bf16.mxu0 %v6201_v52  ;;  %v1363_v8 = vmax.f32 %v1128_v61, 0.0  ;;  %v5625_v47 = vld [vmem:[#allocation4 + $0x588] ss:$16 sps:$4 sm:$0xff]   ;;  %v6348_v56 = vpack.c.bf16 %v1350_v1, %v1342_v15  ;;  %v5633_v61 = vld [vmem:[#allocation4 + $0x5ac] ss:$16 sps:$4 sm:$0xff]  }
 0x1b1   : > { %3662 = vmatprep.mubr.bf16.mxu1 %v6201_v52  ;;  %3705 = vmatprep.subr.bf16.mxu1 %v5621_v19  ;;  %v1364_v13 = vmax.f32 %v1130_v5, 0.0  ;;  %v6345_v48 = vpack.c.bf16 %v1349_v46, %v1341_v4  ;;  %v5639_v46 = vld [vmem:[#allocation4 + $0x5cc] ss:$16 sps:$4 sm:$0xff]  }
 0x1b2   : > { %v6341_v63 = vpack.c.bf16 %v1363_v8, %v1355_v59  ;;  %v1236_v59 = vpop.f32.mrb[56].mxu1 }
 0x1b3   : > { %3254 = vmatpush1.bf16.msra.mxu0 %v5616_v58  ;;  %3706 = vmatpush1.bf16.msra.mxu1 %v5619_v25  ;;  %v6343_v51 = vpack.c.bf16 %v1364_v13, %v1356_v42  ;;  %v1133_v53 = vpop.f32.mrb[60].mxu0  ;;  %v1237_v2 = vadd.f32 %v1236_v59, %v6216_v36  ;;  %v1238_v3 = vpop.f32.mrb[57].mxu1  ;;  %v5628_v25 = vld [vmem:[#allocation4 + $0x5a0] ss:$16 sps:$4 sm:$0xff]  }
 0x1b4   : > { %3255 = vmatprep.subr.bf16.mxu0 %v5624_v55  ;;  %3707 = vmatprep.subr.bf16.mxu1 %v5627_v7  ;;  %v1134_v52 = vadd.f32 %v1133_v53, %v6193_v33  ;;  %v1135_v19 = vpop.f32.mrb[61].mxu0  ;;  %v1239_v6 = vadd.f32 %v1238_v3, %v6221_v39  ;;  %v1240_v57 = vpop.f32.mrb[58].mxu1  ;;  %v5631_v55 = vld [vmem:[#allocation4 + $0x5a8] ss:$16 sps:$4 sm:$0xff]  }
 0x1b5   : > { %v1136_v58 = vadd.f32 %v1135_v19, %v6197_v41  ;;  %v1137_v62 = vpop.f32.mrb[62].mxu0  ;;  %v1357_v15 = vmax.f32 %v1237_v2, 0.0  ;;  %v1241_v12 = vadd.f32 %v1240_v57, %v6216_v36  ;;  %v1242_v13 = vpop.f32.mrb[59].mxu1  ;;  %v5634_v19 = vld [vmem:[#allocation4 + $0x5c0] ss:$16 sps:$4 sm:$0xff]  }
 0x1b6   : > { %3211 = vmatmul.mubr.bf16.gmra.mrb[88].mxu0 %v6199_v49  ;;  %3663 = vmatmul.mubr.bf16.gmra.mrb[88].mxu1 %v6199_v49  ;;  %v1371_v42 = vmax.f32 %v1134_v52, 0.0  ;;  %v1138_v5 = vadd.f32 %v1137_v62, %v6193_v33  ;;  %v1139_v4 = vpop.f32.mrb[63].mxu0  ;;  %v5636_v49 = vld [vmem:[#allocation4 + $0x5c4] ss:$16 sps:$4 sm:$0xff]   ;;  %v1358_v1 = vmax.f32 %v1239_v6, 0.0  ;;  %v1243_v53 = vadd.f32 %v1242_v13, %v6221_v39 }
 0x1b7   : > { %3256 = vmatpush1.bf16.msra.mxu0 %v5622_v45  ;;  %3708 = vmatpush1.bf16.msra.mxu1 %v5625_v47  ;;  %v1372_v7 = vmax.f32 %v1136_v58, 0.0  ;;  %v1140_v8 = vadd.f32 %v1139_v4, %v6197_v41  ;;  %v1365_v47 = vmax.f32 %v1241_v12, 0.0  ;;  %v5642_v62 = vld [vmem:[#allocation4 + $0x5e4] ss:$16 sps:$4 sm:$0xff]   ;;  %v5640_v4 = vld [vmem:[#allocation4 + $0x5e0] ss:$16 sps:$4 sm:$0xff]  }
 0x1b8   : > { %3257 = vmatprep.subr.bf16.mxu0 %v5630_v54  ;;  %3220 = vmatprep.mubr.bf16.mxu0 %v6227_v31  ;;  %v1379_v33 = vmax.f32 %v1138_v5, 0.0  ;;  %v1366_v41 = vmax.f32 %v1243_v53, 0.0  ;;  %v5637_v54 = vld [vmem:[#allocation4 + $0x5c8] ss:$16 sps:$4 sm:$0xff]  }
 0x1b9   : > { %3672 = vmatprep.mubr.bf16.mxu1 %v6227_v31  ;;  %3709 = vmatprep.subr.bf16.mxu1 %v5633_v61  ;;  %v1380_v45 = vmax.f32 %v1140_v8, 0.0  ;;  %v6365_v58 = vpack.c.bf16 %v1365_v47, %v1357_v15  ;;  %v1246_v31 = vpop.f32.mrb[60].mxu1  ;;  %v5645_v61 = vld [vmem:[#allocation4 + $0x5ec] ss:$16 sps:$4 sm:$0xff]   ;;  %v5643_v6 = vld [vmem:[#allocation4 + $0x5e8] ss:$16 sps:$4 sm:$0xff]  }
 0x1ba   : > { %v6361_v52 = vpack.c.bf16 %v1379_v33, %v1371_v42  ;;  %v6367_v2 = vpack.c.bf16 %v1366_v41, %v1358_v1  ;;  %v1247_v3 = vadd.f32 %v1246_v31, %v6216_v36  ;;  %v1248_v42 = vpop.f32.mrb[61].mxu1  ;;  %v5648_v8 = vld [vmem:[#allocation4 + $0x604] ss:$16 sps:$4 sm:$0xff]   ;;  %v5651_v15 = vld [vmem:[#allocation4 + $0x60c] ss:$16 sps:$4 sm:$0xff]  }
 0x1bb   : > { %3258 = vmatpush1.bf16.msra.mxu0 %v5628_v25  ;;  %3710 = vmatpush1.bf16.msra.mxu1 %v5631_v55  ;;  %v6363_v59 = vpack.c.bf16 %v1380_v45, %v1372_v7  ;;  %v1249_v25 = vadd.f32 %v1248_v42, %v6221_v39  ;;  %v1250_v5 = vpop.f32.mrb[62].mxu1  ;;  %v5649_v33 = vld [vmem:[#allocation4 + $0x608] ss:$16 sps:$4 sm:$0xff]   ;;  %v5657_v45 = vld [vmem:[#allocation4 + $0x62c] ss:$16 sps:$4 sm:$0xff]  }
 0x1bc   : > { %3259 = vmatprep.subr.bf16.mxu0 %v5636_v49  ;;  %3711 = vmatprep.subr.bf16.mxu1 %v5639_v46  ;;  %v1373_v57 = vmax.f32 %v1247_v3, 0.0  ;;  %v1251_v55 = vadd.f32 %v1250_v5, %v6216_v36  ;;  %v1252_v7 = vpop.f32.mrb[63].mxu1  ;;  %v5646_v46 = vld [vmem:[#allocation4 + $0x600] ss:$16 sps:$4 sm:$0xff]   ;;  %v5654_v36 = vld [vmem:[#allocation4 + $0x624] ss:$16 sps:$4 sm:$0xff]  }
 0x1bd   : > { %v1374_v12 = vmax.f32 %v1249_v25, 0.0  ;;  %v1253_v13 = vadd.f32 %v1252_v7, %v6221_v39  ;;  %v5652_v39 = vld [vmem:[#allocation4 + $0x620] ss:$16 sps:$4 sm:$0xff]   ;;  %v5660_v47 = vld [vmem:[#allocation4 + $0x644] ss:$16 sps:$4 sm:$0xff]  }
 0x1be   : > { %3221 = vmatmul.mubr.bf16.gmra.mrb[92].mxu0 %v6223_v38  ;;  %3673 = vmatmul.mubr.bf16.gmra.mrb[92].mxu1 %v6223_v38  ;;  %v1381_v38 = vmax.f32 %v1251_v55, 0.0  ;;  %v5663_v41 = vld [vmem:[#allocation4 + $0x64c] ss:$16 sps:$4 sm:$0xff]   ;;  %v5664_v31 = vld [vmem:[#allocation4 + $0x660] ss:$16 sps:$4 sm:$0xff]  }
 0x1bf   : > { %3260 = vmatpush1.bf16.msra.mxu0 %v5634_v19  ;;  %3712 = vmatpush1.bf16.msra.mxu1 %v5637_v54  ;;  %v1382_v49 = vmax.f32 %v1253_v13, 0.0  ;;  %v5658_v19 = vld [vmem:[#allocation4 + $0x640] ss:$16 sps:$4 sm:$0xff]   ;;  %v5661_v54 = vld [vmem:[#allocation4 + $0x648] ss:$16 sps:$4 sm:$0xff]  }
 0x1c0   : > { %3261 = vmatprep.subr.bf16.mxu0 %v5642_v62  ;;  %3263 = vmatprep.mubr.bf16.mxu0 %v6225_v44  ;;  %v6377_v1 = vpack.c.bf16 %v1381_v38, %v1373_v57  ;;  %v5666_v62 = vld [vmem:[#allocation4 + $0x664] ss:$16 sps:$4 sm:$0xff]   ;;  %v5675_v3 = vld [vmem:[#allocation4 + $0x68c] ss:$16 sps:$4 sm:$0xff]   ;;  %v5670_v42 = vld [vmem:[#allocation4 + $0x680] ss:$16 sps:$4 sm:$0xff]  }
 0x1c1   : > { %3713 = vmatprep.subr.bf16.mxu1 %v5645_v61  ;;  %3715 = vmatprep.mubr.bf16.mxu1 %v6225_v44  ;;  %v6379_v53 = vpack.c.bf16 %v1382_v49, %v1374_v12  ;;  %v5655_v44 = vld [vmem:[#allocation4 + $0x628] ss:$16 sps:$4 sm:$0xff]   ;;  %v5678_v5 = vld [vmem:[#allocation4 + $0x6a4] ss:$16 sps:$4 sm:$0xff]   ;;  %v5687_v57 = vld [vmem:[#allocation4 + $0x6cc] ss:$16 sps:$4 sm:$0xff]  }
 0x1c2   : > { %v5667_v61 = vld [vmem:[#allocation4 + $0x668] ss:$16 sps:$4 sm:$0xff]   ;;  %v5682_v55 = vld [vmem:[#allocation4 + $0x6c0] ss:$16 sps:$4 sm:$0xff]   ;;  %v5699_v13 = vld [vmem:[#allocation4 + $0x70c] ss:$16 sps:$4 sm:$0xff]  }
 0x1c3   : > { %3262 = vmatpush1.bf16.msra.mxu0 %v5640_v4  ;;  %3714 = vmatpush1.bf16.msra.mxu1 %v5643_v6  ;;  %v5673_v25 = vld [vmem:[#allocation4 + $0x688] ss:$16 sps:$4 sm:$0xff]   ;;  %v5676_v4 = vld [vmem:[#allocation4 + $0x6a0] ss:$16 sps:$4 sm:$0xff]  }
 0x1c4   : > { %3344 = vmatprep.subr.bf16.mxu0 %v5648_v8  ;;  %3796 = vmatprep.subr.bf16.mxu1 %v5651_v15  ;;  %v5679_v6 = vld [vmem:[#allocation4 + $0x6a8] ss:$16 sps:$4 sm:$0xff]   ;;  %v5690_v8 = vld [vmem:[#allocation4 + $0x6e4] ss:$16 sps:$4 sm:$0xff]   ;;  %v5688_v15 = vld [vmem:[#allocation4 + $0x6e0] ss:$16 sps:$4 sm:$0xff]  }
 0x1c5   : > { %v5685_v7 = vld [vmem:[#allocation4 + $0x6c8] ss:$16 sps:$4 sm:$0xff]   ;;  %v5694_v38 = vld [vmem:[#allocation4 + $0x700] ss:$16 sps:$4 sm:$0xff]  }
 0x1c6   : > { %3264 = vmatmul.mubr.bf16.vlgmr.msra.gmra.mrb[64].mxu0 %v6218_v21  ;;  %3716 = vmatmul.mubr.bf16.vlgmr.msra.gmra.mrb[64].mxu1 %v6218_v21  ;;  %v5669_v21 = vld [vmem:[#allocation4 + $0x66c] ss:$16 sps:$4 sm:$0xff]   ;;  %v5691_v12 = vld [vmem:[#allocation4 + $0x6e8] ss:$16 sps:$4 sm:$0xff]  }
 0x1c7   : > { %3345 = vmatpush1.bf16.msra.mxu0 %v5646_v46  ;;  %3797 = vmatpush1.bf16.msra.mxu1 %v5649_v33  ;;  %v5697_v49 = vld [vmem:[#allocation4 + $0x708] ss:$16 sps:$4 sm:$0xff]   ;;  %v5702_v46 = vld [vmem:[#allocation4 + $0x724] ss:$16 sps:$4 sm:$0xff]   ;;  %v5700_v33 = vld [vmem:[#allocation4 + $0x720] ss:$16 sps:$4 sm:$0xff]  }
 0x1c8   : > { %3346 = vmatprep.subr.bf16.mxu0 %v5654_v36  ;;  %3273 = vmatprep.mubr.bf16.mxu0 %v6243_v34  ;;  %v5703_v36 = vld [vmem:[#allocation4 + $0x728] ss:$16 sps:$4 sm:$0xff]  }
 0x1c9   : > { %3725 = vmatprep.mubr.bf16.mxu1 %v6243_v34  ;;  %3798 = vmatprep.subr.bf16.mxu1 %v5657_v45  ;;  %v5672_v34 = vld [vmem:[#allocation4 + $0x684] ss:$16 sps:$4 sm:$0xff]   ;;  %v5711_v45 = vld [vmem:[#allocation4 + $0x74c] ss:$16 sps:$4 sm:$0xff]  }
 0x1cb   : > { %3347 = vmatpush1.bf16.msra.mxu0 %v5652_v39  ;;  %3799 = vmatpush1.bf16.msra.mxu1 %v5655_v44  ;;  %v5706_v39 = vld [vmem:[#allocation4 + $0x740] ss:$16 sps:$4 sm:$0xff]   ;;  %v5709_v44 = vld [vmem:[#allocation4 + $0x748] ss:$16 sps:$4 sm:$0xff]  }
 0x1cc   : > { %3348 = vmatprep.subr.bf16.mxu0 %v5660_v47  ;;  %3800 = vmatprep.subr.bf16.mxu1 %v5663_v41  ;;  %v5714_v47 = vld [vmem:[#allocation4 + $0x764] ss:$16 sps:$4 sm:$0xff]   ;;  %v5712_v41 = vld [vmem:[#allocation4 + $0x760] ss:$16 sps:$4 sm:$0xff]  }
 0x1ce   : > { %3274 = vmatmul.mubr.bf16.gmra.mrb[68].mxu0 %v6241_v28  ;;  %3726 = vmatmul.mubr.bf16.gmra.mrb[68].mxu1 %v6241_v28  ;;  %v5681_v28 = vld [vmem:[#allocation4 + $0x6ac] ss:$16 sps:$4 sm:$0xff]  }
 0x1cf   : > { %3349 = vmatpush1.bf16.msra.mxu0 %v5658_v19  ;;  %3801 = vmatpush1.bf16.msra.mxu1 %v5661_v54  ;;  %v5715_v19 = vld [vmem:[#allocation4 + $0x768] ss:$16 sps:$4 sm:$0xff]   ;;  %v5723_v54 = vld [vmem:[#allocation4 + $0x78c] ss:$16 sps:$4 sm:$0xff]  }
 0x1d0   : > { %3350 = vmatprep.subr.bf16.mxu0 %v5666_v62  ;;  %3283 = vmatprep.mubr.bf16.mxu0 %v6263_v26  ;;  %v5718_v62 = vld [vmem:[#allocation4 + $0x780] ss:$16 sps:$4 sm:$0xff]  }
 0x1d1   : > { %3735 = vmatprep.mubr.bf16.mxu1 %v6263_v26  ;;  %3802 = vmatprep.subr.bf16.mxu1 %v5669_v21  ;;  %v5684_v26 = vld [vmem:[#allocation4 + $0x6c4] ss:$16 sps:$4 sm:$0xff]   ;;  %v5721_v21 = vld [vmem:[#allocation4 + $0x788] ss:$16 sps:$4 sm:$0xff]  }
 0x1d3   : > { %3351 = vmatpush1.bf16.msra.mxu0 %v5664_v31  ;;  %3803 = vmatpush1.bf16.msra.mxu1 %v5667_v61  ;;  %v5726_v31 = vld [vmem:[#allocation4 + $0x7a4] ss:$16 sps:$4 sm:$0xff]   ;;  %v5724_v61 = vld [vmem:[#allocation4 + $0x7a0] ss:$16 sps:$4 sm:$0xff]  }
 0x1d4   : > { %3352 = vmatprep.subr.bf16.mxu0 %v5672_v34  ;;  %3804 = vmatprep.subr.bf16.mxu1 %v5675_v3  ;;  %v5727_v34 = vld [vmem:[#allocation4 + $0x7a8] ss:$16 sps:$4 sm:$0xff]   ;;  %v5735_v3 = vld [vmem:[#allocation4 + $0x7cc] ss:$16 sps:$4 sm:$0xff]  }
 0x1d6   : > { %3284 = vmatmul.mubr.bf16.gmra.mrb[72].mxu0 %v6261_v17  ;;  %3736 = vmatmul.mubr.bf16.gmra.mrb[72].mxu1 %v6261_v17  ;;  %v5693_v17 = vld [vmem:[#allocation4 + $0x6ec] ss:$16 sps:$4 sm:$0xff]  }
 0x1d7   : > { %3353 = vmatpush1.bf16.msra.mxu0 %v5670_v42  ;;  %3805 = vmatpush1.bf16.msra.mxu1 %v5673_v25  ;;  %v5730_v42 = vld [vmem:[#allocation4 + $0x7c0] ss:$16 sps:$4 sm:$0xff]   ;;  %v5733_v25 = vld [vmem:[#allocation4 + $0x7c8] ss:$16 sps:$4 sm:$0xff]  }
 0x1d8   : > { %3354 = vmatprep.subr.bf16.mxu0 %v5678_v5  ;;  %3293 = vmatprep.mubr.bf16.mxu0 %v6283_v22  ;;  %v5738_v5 = vld [vmem:[#allocation4 + $0x7e4] ss:$16 sps:$4 sm:$0xff]  }
 0x1d9   : > { %3745 = vmatprep.mubr.bf16.mxu1 %v6283_v22  ;;  %3806 = vmatprep.subr.bf16.mxu1 %v5681_v28  ;;  %v5696_v22 = vld [vmem:[#allocation4 + $0x704] ss:$16 sps:$4 sm:$0xff]   ;;  %v5736_v28 = vld [vmem:[#allocation4 + $0x7e0] ss:$16 sps:$4 sm:$0xff]  }
 0x1db   : > { %3355 = vmatpush1.bf16.msra.mxu0 %v5676_v4  ;;  %3807 = vmatpush1.bf16.msra.mxu1 %v5679_v6  ;;  %v5742_v4 = vld [vmem:[%s6673_s5 + $0x40] sm:$0xff]  }
 0x1dc   : > { %3356 = vmatprep.subr.bf16.mxu0 %v5684_v26  ;;  %3808 = vmatprep.subr.bf16.mxu1 %v5687_v57  ;;  %v5744_v6 = vld [vmem:[%s6673_s5 + $0xc0] sm:$0xff]   ;;  %v5746_v26 = vld [vmem:[%s6673_s5 + $0x48] sm:$0xff]  }
 0x1dd   : > { %v5748_v57 = vld [vmem:[%s6673_s5 + $0xc8] sm:$0xff]  }
 0x1de   : > { %3294 = vmatmul.mubr.bf16.gmra.mrb[76].mxu0 %v6281_v11  ;;  %3746 = vmatmul.mubr.bf16.gmra.mrb[76].mxu1 %v6281_v11  ;;  %v5705_v11 = vld [vmem:[#allocation4 + $0x72c] ss:$16 sps:$4 sm:$0xff]  }
 0x1df   : > { %3357 = vmatpush1.bf16.msra.mxu0 %v5682_v55  ;;  %3809 = vmatpush1.bf16.msra.mxu1 %v5685_v7  ;;  %v5747_v55 = vld [vmem:[%s6673_s5 + $0x8] sm:$0xff]  }
 0x1e0   : > { %3358 = vmatprep.subr.bf16.mxu0 %v5690_v8  ;;  %3303 = vmatprep.mubr.bf16.mxu0 %v6303_v23  ;;  %v5749_v7 = vld [vmem:[%s6673_s5 + $0x88] sm:$0xff]   ;;  %v5750_v8 = vld [vmem:[%s6673_s5 + $0x50] sm:$0xff]  }
 0x1e1   : > { %3755 = vmatprep.mubr.bf16.mxu1 %v6303_v23  ;;  %3810 = vmatprep.subr.bf16.mxu1 %v5693_v17  ;;  %v5708_v23 = vld [vmem:[#allocation4 + $0x744] ss:$16 sps:$4 sm:$0xff]  }
 0x1e2   : > { %v5753_v17 = vld [vmem:[%s6673_s5 + $0x90] sm:$0xff]  }
 0x1e3   : > { %3359 = vmatpush1.bf16.msra.mxu0 %v5688_v15  ;;  %3811 = vmatpush1.bf16.msra.mxu1 %v5691_v12  ;;  %v5754_v15 = vld [vmem:[%s6673_s5 + $0x58] sm:$0xff]  }
 0x1e4   : > { %3360 = vmatprep.subr.bf16.mxu0 %v5696_v22  ;;  %3812 = vmatprep.subr.bf16.mxu1 %v5699_v13  ;;  %v5756_v12 = vld [vmem:[%s6673_s5 + $0xd8] sm:$0xff]  }
 0x1e5   : > { %v5755_v22 = vld [vmem:[%s6673_s5 + $0x18] sm:$0xff]  }
 0x1e6   : > { %3304 = vmatmul.mubr.bf16.gmra.mrb[80].mxu0 %v6301_v9  ;;  %3756 = vmatmul.mubr.bf16.gmra.mrb[80].mxu1 %v6301_v9  ;;  %v5717_v9 = vld [vmem:[#allocation4 + $0x76c] ss:$16 sps:$4 sm:$0xff]  }
 0x1e7   : > { %3361 = vmatpush1.bf16.msra.mxu0 %v5694_v38  ;;  %3813 = vmatpush1.bf16.msra.mxu1 %v5697_v49  ;;  %v5757_v13 = vld [vmem:[%s6673_s5 + $0x98] sm:$0xff]   ;;  %v5758_v38 = vld [vmem:[%s6673_s5 + $0x60] sm:$0xff]  }
 0x1e8   : > { %3362 = vmatprep.subr.bf16.mxu0 %v5702_v46  ;;  %3313 = vmatprep.mubr.bf16.mxu0 %v6323_v10  ;;  %v5761_v49 = vld [vmem:[%s6673_s5 + $0xa0] sm:$0xff]   ;;  %v5762_v46 = vld [vmem:[%s6673_s5 + $0x68] sm:$0xff]  }
 0x1e9   : > { %3765 = vmatprep.mubr.bf16.mxu1 %v6323_v10  ;;  %3814 = vmatprep.subr.bf16.mxu1 %v5705_v11  ;;  %v5720_v10 = vld [vmem:[#allocation4 + $0x784] ss:$16 sps:$4 sm:$0xff]   ;;  %v5764_v11 = vld [vmem:[%s6673_s5 + $0xe8] sm:$0xff]  }
 0x1eb   : > { %3363 = vmatpush1.bf16.msra.mxu0 %v5700_v33  ;;  %3815 = vmatpush1.bf16.msra.mxu1 %v5703_v36  ;;  %v5763_v33 = vld [vmem:[%s6673_s5 + $0x28] sm:$0xff]  }
 0x1ec   : > { %3364 = vmatprep.subr.bf16.mxu0 %v5708_v23  ;;  %3816 = vmatprep.subr.bf16.mxu1 %v5711_v45  ;;  %v5765_v36 = vld [vmem:[%s6673_s5 + $0xa8] sm:$0xff]   ;;  %v5766_v23 = vld [vmem:[%s6673_s5 + $0x70] sm:$0xff]  }
 0x1ed   : > { %v5769_v45 = vld [vmem:[%s6673_s5 + $0xb0] sm:$0xff]  }
 0x1ee   : > { %3314 = vmatmul.mubr.bf16.gmra.mrb[84].mxu0 %v6321_v14  ;;  %3766 = vmatmul.mubr.bf16.gmra.mrb[84].mxu1 %v6321_v14  ;;  %v5729_v14 = vld [vmem:[#allocation4 + $0x7ac] ss:$16 sps:$4 sm:$0xff]  }
 0x1ef   : > { %3365 = vmatpush1.bf16.msra.mxu0 %v5706_v39  ;;  %3817 = vmatpush1.bf16.msra.mxu1 %v5709_v44 }
 0x1f0   : > { %3366 = vmatprep.subr.bf16.mxu0 %v5714_v47  ;;  %3323 = vmatprep.mubr.bf16.mxu0 %v6343_v51 }
 0x1f1   : > { %3775 = vmatprep.mubr.bf16.mxu1 %v6343_v51  ;;  %3818 = vmatprep.subr.bf16.mxu1 %v5717_v9  ;;  %v5732_v51 = vld [vmem:[#allocation4 + $0x7c4] ss:$16 sps:$4 sm:$0xff]  }
 0x1f3   : > { %3367 = vmatpush1.bf16.msra.mxu0 %v5712_v41  ;;  %3819 = vmatpush1.bf16.msra.mxu1 %v5715_v19 }
 0x1f4   : > { %3368 = vmatprep.subr.bf16.mxu0 %v5720_v10  ;;  %3820 = vmatprep.subr.bf16.mxu1 %v5723_v54 }
 0x1f6   : > { %3324 = vmatmul.mubr.bf16.gmra.mrb[88].mxu0 %v6341_v63  ;;  %3776 = vmatmul.mubr.bf16.gmra.mrb[88].mxu1 %v6341_v63  ;;  %v5741_v63 = vld [vmem:[#allocation4 + $0x7ec] ss:$16 sps:$4 sm:$0xff]  }
 0x1f7   : > { %3369 = vmatpush1.bf16.msra.mxu0 %v5718_v62  ;;  %3821 = vmatpush1.bf16.msra.mxu1 %v5721_v21 }
 0x1f8   : > { %3370 = vmatprep.subr.bf16.mxu0 %v5726_v31  ;;  %3333 = vmatprep.mubr.bf16.mxu0 %v6363_v59 }
 0x1f9   : > { %3785 = vmatprep.mubr.bf16.mxu1 %v6363_v59  ;;  %3822 = vmatprep.subr.bf16.mxu1 %v5729_v14  ;;  %v5739_v59 = vld [vmem:[#allocation4 + $0x7e8] ss:$16 sps:$4 sm:$0xff]  }
 0x1fb   : > { %3371 = vmatpush1.bf16.msra.mxu0 %v5724_v61  ;;  %3823 = vmatpush1.bf16.msra.mxu1 %v5727_v34 }
 0x1fc   : > { %3372 = vmatprep.subr.bf16.mxu0 %v5732_v51  ;;  %3824 = vmatprep.subr.bf16.mxu1 %v5735_v3 }
 0x1fe   : > { %3334 = vmatmul.mubr.bf16.gmra.mrb[92].mxu0 %v6361_v52  ;;  %3786 = vmatmul.mubr.bf16.gmra.mrb[92].mxu1 %v6361_v52  ;;  %v5743_v52 = vld [vmem:[%s6673_s5] sm:$0xff]  }
 0x1ff   : > { %3373 = vmatpush1.bf16.msra.mxu0 %v5730_v42  ;;  %3376 = vmatprep.mubr.bf16.mxu0 %v6248_v43 }
 0x200   : > { %3825 = vmatpush1.bf16.msra.mxu1 %v5733_v25  ;;  %3828 = vmatprep.mubr.bf16.mxu1 %v6248_v43  ;;  %v5745_v43 = vld [vmem:[%s6673_s5 + $0x80] sm:$0xff]  }
 0x201   : > { %3374 = vmatprep.subr.bf16.mxu0 %v5738_v5  ;;  %3826 = vmatprep.subr.bf16.mxu1 %v5741_v63 }
 0x203   : > { %3375 = vmatpush1.bf16.msra.mxu0 %v5736_v28 }
 0x204   : > { %3827 = vmatpush1.bf16.msra.mxu1 %v5739_v59  ;;  %4932 = vmatprep.subr.bf16.mxu0 %v5742_v4 }
 0x205   : > { %4996 = vmatprep.subr.bf16.mxu1 %v5744_v6 }
 0x206   : > { %3377 = vmatmul.mubr.bf16.vlgmr.msra.gmra.mrb[64].mxu0 %v6245_v37 }
 0x207   : > { %3829 = vmatmul.mubr.bf16.vlgmr.msra.gmra.mrb[64].mxu1 %v6245_v37  ;;  %3386 = vmatprep.mubr.bf16.mxu0 %v6268_v16  ;;  %v5752_v37 = vld [vmem:[%s6673_s5 + $0xd0] sm:$0xff]  }
 0x208   : > { %3838 = vmatprep.mubr.bf16.mxu1 %v6268_v16  ;;  %4933 = vmatpush3.bf16.msra.mxu0 %v5743_v52  ;;  %v5751_v16 = vld [vmem:[%s6673_s5 + $0x10] sm:$0xff]  }
 0x209   : > { %4997 = vmatpush3.bf16.msra.mxu1 %v5745_v43  ;;  %4934 = vmatprep.subr.bf16.mxu0 %v5746_v26 }
 0x20a   : > { %4998 = vmatprep.subr.bf16.mxu1 %v5748_v57 }
 0x20c   : > { %4935 = vmatpush3.bf16.msra.mxu0 %v5747_v55 }
 0x20d   : > { %4999 = vmatpush3.bf16.msra.mxu1 %v5749_v7  ;;  %4936 = vmatprep.subr.bf16.mxu0 %v5750_v8 }
 0x20e   : > { %3387 = vmatmul.mubr.bf16.gmra.mrb[68].mxu0 %v6265_v32  ;;  %5000 = vmatprep.subr.bf16.mxu1 %v5752_v37 }
 0x20f   : > { %3839 = vmatmul.mubr.bf16.gmra.mrb[68].mxu1 %v6265_v32  ;;  %3396 = vmatprep.mubr.bf16.mxu0 %v6288_v35  ;;  %v5760_v32 = vld [vmem:[%s6673_s5 + $0xe0] sm:$0xff]  }
 0x210   : > { %3848 = vmatprep.mubr.bf16.mxu1 %v6288_v35  ;;  %4937 = vmatpush3.bf16.msra.mxu0 %v5751_v16  ;;  %v5759_v35 = vld [vmem:[%s6673_s5 + $0x20] sm:$0xff]  }
 0x211   : > { %5001 = vmatpush3.bf16.msra.mxu1 %v5753_v17  ;;  %4938 = vmatprep.subr.bf16.mxu0 %v5754_v15 }
 0x212   : > { %5002 = vmatprep.subr.bf16.mxu1 %v5756_v12 }
 0x214   : > { %4939 = vmatpush3.bf16.msra.mxu0 %v5755_v22 }
 0x215   : > { %5003 = vmatpush3.bf16.msra.mxu1 %v5757_v13  ;;  %4940 = vmatprep.subr.bf16.mxu0 %v5758_v38 }
 0x216   : > { %3397 = vmatmul.mubr.bf16.gmra.mrb[72].mxu0 %v6285_v29  ;;  %5004 = vmatprep.subr.bf16.mxu1 %v5760_v32 }
 0x217   : > { %3849 = vmatmul.mubr.bf16.gmra.mrb[72].mxu1 %v6285_v29  ;;  %3406 = vmatprep.mubr.bf16.mxu0 %v6308_v40  ;;  %v5768_v29 = vld [vmem:[%s6673_s5 + $0xf0] sm:$0xff]  }
 0x218   : > { %3858 = vmatprep.mubr.bf16.mxu1 %v6308_v40  ;;  %4941 = vmatpush3.bf16.msra.mxu0 %v5759_v35  ;;  %v5767_v40 = vld [vmem:[%s6673_s5 + $0x30] sm:$0xff]  }
 0x219   : > { %5005 = vmatpush3.bf16.msra.mxu1 %v5761_v49  ;;  %4942 = vmatprep.subr.bf16.mxu0 %v5762_v46 }
 0x21a   : > { %5006 = vmatprep.subr.bf16.mxu1 %v5764_v11 }
 0x21c   : > { %4943 = vmatpush3.bf16.msra.mxu0 %v5763_v33 }
 0x21d   : > { %5007 = vmatpush3.bf16.msra.mxu1 %v5765_v36  ;;  %4944 = vmatprep.subr.bf16.mxu0 %v5766_v23 }
 0x21e   : > { %3407 = vmatmul.mubr.bf16.gmra.mrb[76].mxu0 %v6305_v60  ;;  %5008 = vmatprep.subr.bf16.mxu1 %v5768_v29 }
 0x21f   : > { %3859 = vmatmul.mubr.bf16.gmra.mrb[76].mxu1 %v6305_v60  ;;  %3416 = vmatprep.mubr.bf16.mxu0 %v6328_v50  ;;  %v5770_v60 = vld [vmem:[%s6673_s5 + $0x78] sm:$0xff]  }
 0x220   : > { %3868 = vmatprep.mubr.bf16.mxu1 %v6328_v50  ;;  %4945 = vmatpush3.bf16.msra.mxu0 %v5767_v40  ;;  %v5771_v50 = vld [vmem:[%s6673_s5 + $0x38] sm:$0xff]  }
 0x221   : > { %5009 = vmatpush3.bf16.msra.mxu1 %v5769_v45  ;;  %4946 = vmatprep.subr.bf16.mxu0 %v5770_v60 }
 0x224   : > { %4947 = vmatpush3.bf16.msra.mxu0 %v5771_v50 }
 0x226   : > { %3417 = vmatmul.mubr.bf16.gmra.mrb[80].mxu0 %v6325_v24 }
 0x227   : > { %3869 = vmatmul.mubr.bf16.gmra.mrb[80].mxu1 %v6325_v24  ;;  %3426 = vmatprep.mubr.bf16.mxu0 %v6348_v56  ;;  %v5772_v24 = vld [vmem:[%s6673_s5 + $0xf8] sm:$0xff]  }
 0x228   : > { %3878 = vmatprep.mubr.bf16.mxu1 %v6348_v56  ;;  %5010 = vmatprep.subr.bf16.mxu1 %v5772_v24  ;;  %v1703_v56 = vld [vmem:[%s6672_s4] sm:$0xf] }
 0x22e   : > { %3427 = vmatmul.mubr.bf16.gmra.mrb[84].mxu0 %v6345_v48 }
 0x22f   : > { %3879 = vmatmul.mubr.bf16.gmra.mrb[84].mxu1 %v6345_v48  ;;  %3436 = vmatprep.mubr.bf16.mxu0 %v6367_v2  ;;  %v5773_v48 = vld [vmem:[%s6673_s5 + $0xb8] sm:$0xff]  }
 0x230   : > { %3888 = vmatprep.mubr.bf16.mxu1 %v6367_v2  ;;  %5011 = vmatpush3.bf16.msra.mxu1 %v5773_v48  ;;  %v6548_v2 = vrot.slane %v1703_v56, %v405_v27 }
 0x236   : > { %3437 = vmatmul.mubr.bf16.gmra.mrb[88].mxu0 %v6365_v58 }
 0x237   : > { %3889 = vmatmul.mubr.bf16.gmra.mrb[88].mxu1 %v6365_v58  ;;  %3446 = vmatprep.mubr.bf16.mxu0 %v6379_v53  ;;  %v6544_v58 = vrot.slane %v1703_v56, %v397_v18 }
 0x238   : > { %3898 = vmatprep.mubr.bf16.mxu1 %v6379_v53  ;;  %v6556_v53 = vrot.slane %v1703_v56, %v409_v30 }
 0x23e   : > { %3447 = vmatmul.mubr.bf16.gmra.mrb[92].mxu0 %v6377_v1 }
 0x23f   : > { %3899 = vmatmul.mubr.bf16.gmra.mrb[92].mxu1 %v6377_v1  ;;  %v6552_v1 = vrot.slane %v1703_v56, %v401_v20 }
 0x2d9   : > { %v3378_v39 = vpop.f32.mrb[64].mxu0 }
 0x2da   : > { %v5060_v44 = vadd.f32 %v3378_v39, %v6544_v58  ;;  %v3830_v47 = vpop.f32.mrb[64].mxu1  ;;  %v3380_v9 = vpop.f32.mrb[65].mxu0 }
 0x2db   : > { %v5092_v18 = vadd.f32 %v3830_v47, %v6548_v2  ;;  %v5061_v41 = vadd.f32 %v3380_v9, %v6552_v1  ;;  %v3832_v19 = vpop.f32.mrb[65].mxu1  ;;  %v3382_v27 = vpop.f32.mrb[66].mxu0 }
 0x2dc   : > { %v5093_v10 = vadd.f32 %v3832_v19, %v6556_v53  ;;  %v5062_v20 = vadd.f32 %v3382_v27, %v6544_v58  ;;  %v3834_v54 = vpop.f32.mrb[66].mxu1  ;;  %v3384_v62 = vpop.f32.mrb[67].mxu0  ;;  %v3909_v31 = vmax.f32 %v5060_v44, 0.0 }
 0x2dd   : > { %v5094_v0 = vadd.f32 %v3834_v54, %v6548_v2  ;;  %v5063_v30 = vadd.f32 %v3384_v62, %v6552_v1  ;;  %v3836_v21 = vpop.f32.mrb[67].mxu1  ;;  %v3911_v34 = vmax.f32 %v5092_v18, 0.0  ;;  %v3910_v51 = vmax.f32 %v5061_v41, 0.0 }
 0x2de   : > { %v3913_v14 = vmax.f32 %v5062_v20, 0.0  ;;  %v5095_v61 = vadd.f32 %v3836_v21, %v6556_v53  ;;  %v3912_v25 = vmax.f32 %v5093_v10, 0.0 }
 0x2df   : > { %v3915_v3 = vmax.f32 %v5094_v0, 0.0  ;;  %v3914_v42 = vmax.f32 %v5063_v30, 0.0 }
 0x2e0   : > { %v3973_v5 = vpack.c.bf16 %v3913_v14, %v3909_v31  ;;  %v3916_v63 = vmax.f32 %v5095_v61, 0.0 }
 0x2e1   : > { %v3975_v28 = vpack.c.bf16 %v3915_v3, %v3911_v34  ;;  %v3974_v59 = vpack.c.bf16 %v3914_v42, %v3910_v51  ;;  %v3388_v4 = vpop.f32.mrb[68].mxu0 }
 0x2e2   : > { %v3976_v6 = vpack.c.bf16 %v3916_v63, %v3912_v25  ;;  %v5064_v52 = vadd.f32 %v3388_v4, %v6544_v58  ;;  %v3840_v43 = vpop.f32.mrb[68].mxu1  ;;  %v3390_v26 = vpop.f32.mrb[69].mxu0 }
 0x2e3   : > { %v5096_v57 = vadd.f32 %v3840_v43, %v6548_v2  ;;  %v5065_v55 = vadd.f32 %v3390_v26, %v6552_v1  ;;  %v3842_v7 = vpop.f32.mrb[69].mxu1  ;;  %v3392_v8 = vpop.f32.mrb[70].mxu0  ;;  %4300 = vmatprep.mubr.bf16.mxu0 %v3974_v59 }
 0x2e4   : > { %v5097_v37 = vadd.f32 %v3842_v7, %v6556_v53  ;;  %v5066_v16 = vadd.f32 %v3392_v8, %v6544_v58  ;;  %v3844_v17 = vpop.f32.mrb[70].mxu1  ;;  %4397 = vmatprep.mubr.bf16.mxu1 %v3976_v6  ;;  %v3394_v15 = vpop.f32.mrb[71].mxu0  ;;  %4301 = vmatmul.mubr.bf16.vlgmr.msra.gmra.mrb[96].mxu0 %v3973_v5  ;;  %v3917_v38 = vmax.f32 %v5064_v52, 0.0 }
 0x2e5   : > { %v5098_v12 = vadd.f32 %v3844_v17, %v6548_v2  ;;  %v5067_v22 = vadd.f32 %v3394_v15, %v6552_v1  ;;  %v3846_v13 = vpop.f32.mrb[71].mxu1  ;;  %4398 = vmatmul.mubr.bf16.vlgmr.msra.gmra.mrb[96].mxu1 %v3975_v28  ;;  %v3919_v49 = vmax.f32 %v5096_v57, 0.0  ;;  %v3918_v46 = vmax.f32 %v5065_v55, 0.0 }
 0x2e6   : > { %v3921_v32 = vmax.f32 %v5066_v16, 0.0  ;;  %v5099_v35 = vadd.f32 %v3846_v13, %v6556_v53  ;;  %v3920_v36 = vmax.f32 %v5097_v37, 0.0 }
 0x2e7   : > { %v3923_v11 = vmax.f32 %v5098_v12, 0.0  ;;  %v3922_v33 = vmax.f32 %v5067_v22, 0.0 }
 0x2e8   : > { %v3977_v23 = vpack.c.bf16 %v3921_v32, %v3917_v38  ;;  %v3924_v29 = vmax.f32 %v5099_v35, 0.0 }
 0x2e9   : > { %v3979_v40 = vpack.c.bf16 %v3923_v11, %v3919_v49  ;;  %v3978_v45 = vpack.c.bf16 %v3922_v33, %v3918_v46  ;;  %v3398_v60 = vpop.f32.mrb[72].mxu0 }
 0x2ea   : > { %v3980_v24 = vpack.c.bf16 %v3924_v29, %v3920_v36  ;;  %v5068_v50 = vadd.f32 %v3398_v60, %v6544_v58  ;;  %v3850_v48 = vpop.f32.mrb[72].mxu1  ;;  %v3400_v56 = vpop.f32.mrb[73].mxu0 }
 0x2eb   : > { %v5100_v39 = vadd.f32 %v3850_v48, %v6548_v2  ;;  %v5069_v44 = vadd.f32 %v3400_v56, %v6552_v1  ;;  %v3852_v47 = vpop.f32.mrb[73].mxu1  ;;  %v3402_v9 = vpop.f32.mrb[74].mxu0  ;;  %4308 = vmatprep.mubr.bf16.mxu0 %v3978_v45 }
 0x2ec   : > { %v5101_v18 = vadd.f32 %v3852_v47, %v6556_v53  ;;  %v5070_v41 = vadd.f32 %v3402_v9, %v6544_v58  ;;  %v3854_v19 = vpop.f32.mrb[74].mxu1  ;;  %4405 = vmatprep.mubr.bf16.mxu1 %v3980_v24  ;;  %v3404_v27 = vpop.f32.mrb[75].mxu0  ;;  %4309 = vmatmul.mubr.bf16.gmra.mrb[100].mxu0 %v3977_v23  ;;  %v3925_v62 = vmax.f32 %v5068_v50, 0.0 }
 0x2ed   : > { %v5102_v10 = vadd.f32 %v3854_v19, %v6548_v2  ;;  %v5071_v20 = vadd.f32 %v3404_v27, %v6552_v1  ;;  %v3856_v54 = vpop.f32.mrb[75].mxu1  ;;  %4406 = vmatmul.mubr.bf16.gmra.mrb[100].mxu1 %v3979_v40  ;;  %v3927_v21 = vmax.f32 %v5100_v39, 0.0  ;;  %v3926_v31 = vmax.f32 %v5069_v44, 0.0 }
 0x2ee   : > { %v3929_v0 = vmax.f32 %v5070_v41, 0.0  ;;  %v5103_v30 = vadd.f32 %v3856_v54, %v6556_v53  ;;  %v3928_v34 = vmax.f32 %v5101_v18, 0.0 }
 0x2ef   : > { %v3931_v14 = vmax.f32 %v5102_v10, 0.0  ;;  %v3930_v61 = vmax.f32 %v5071_v20, 0.0 }
 0x2f0   : > { %v3981_v51 = vpack.c.bf16 %v3929_v0, %v3925_v62  ;;  %v3932_v3 = vmax.f32 %v5103_v30, 0.0 }
 0x2f1   : > { %v3983_v42 = vpack.c.bf16 %v3931_v14, %v3927_v21  ;;  %v3982_v25 = vpack.c.bf16 %v3930_v61, %v3926_v31  ;;  %v3408_v5 = vpop.f32.mrb[76].mxu0 }
 0x2f2   : > { %v3984_v63 = vpack.c.bf16 %v3932_v3, %v3928_v34  ;;  %v5072_v28 = vadd.f32 %v3408_v5, %v6544_v58  ;;  %v3860_v59 = vpop.f32.mrb[76].mxu1  ;;  %v3410_v4 = vpop.f32.mrb[77].mxu0 }
 0x2f3   : > { %v5104_v6 = vadd.f32 %v3860_v59, %v6548_v2  ;;  %v5073_v52 = vadd.f32 %v3410_v4, %v6552_v1  ;;  %v3862_v43 = vpop.f32.mrb[77].mxu1  ;;  %v3412_v26 = vpop.f32.mrb[78].mxu0  ;;  %4316 = vmatprep.mubr.bf16.mxu0 %v3982_v25 }
 0x2f4   : > { %v5105_v57 = vadd.f32 %v3862_v43, %v6556_v53  ;;  %v5074_v55 = vadd.f32 %v3412_v26, %v6544_v58  ;;  %v3864_v7 = vpop.f32.mrb[78].mxu1  ;;  %4413 = vmatprep.mubr.bf16.mxu1 %v3984_v63  ;;  %v3414_v8 = vpop.f32.mrb[79].mxu0  ;;  %4317 = vmatmul.mubr.bf16.gmra.mrb[104].mxu0 %v3981_v51  ;;  %v3933_v15 = vmax.f32 %v5072_v28, 0.0 }
 0x2f5   : > { %v5106_v37 = vadd.f32 %v3864_v7, %v6548_v2  ;;  %v5075_v16 = vadd.f32 %v3414_v8, %v6552_v1  ;;  %v3866_v17 = vpop.f32.mrb[79].mxu1  ;;  %4414 = vmatmul.mubr.bf16.gmra.mrb[104].mxu1 %v3983_v42  ;;  %v3935_v13 = vmax.f32 %v5104_v6, 0.0  ;;  %v3934_v38 = vmax.f32 %v5073_v52, 0.0 }
 0x2f6   : > { %v3937_v12 = vmax.f32 %v5074_v55, 0.0  ;;  %v5107_v22 = vadd.f32 %v3866_v17, %v6556_v53  ;;  %v3936_v49 = vmax.f32 %v5105_v57, 0.0 }
 0x2f7   : > { %v3939_v32 = vmax.f32 %v5106_v37, 0.0  ;;  %v3938_v35 = vmax.f32 %v5075_v16, 0.0 }
 0x2f8   : > { %v3985_v46 = vpack.c.bf16 %v3937_v12, %v3933_v15  ;;  %v3940_v11 = vmax.f32 %v5107_v22, 0.0 }
 0x2f9   : > { %v3987_v33 = vpack.c.bf16 %v3939_v32, %v3935_v13  ;;  %v3986_v36 = vpack.c.bf16 %v3938_v35, %v3934_v38  ;;  %v3418_v23 = vpop.f32.mrb[80].mxu0 }
 0x2fa   : > { %v3988_v29 = vpack.c.bf16 %v3940_v11, %v3936_v49  ;;  %v5076_v40 = vadd.f32 %v3418_v23, %v6544_v58  ;;  %v3870_v45 = vpop.f32.mrb[80].mxu1  ;;  %v3420_v60 = vpop.f32.mrb[81].mxu0 }
 0x2fb   : > { %v5108_v24 = vadd.f32 %v3870_v45, %v6548_v2  ;;  %v5077_v50 = vadd.f32 %v3420_v60, %v6552_v1  ;;  %v3872_v48 = vpop.f32.mrb[81].mxu1  ;;  %v3422_v56 = vpop.f32.mrb[82].mxu0  ;;  %4324 = vmatprep.mubr.bf16.mxu0 %v3986_v36 }
 0x2fc   : > { %v5109_v39 = vadd.f32 %v3872_v48, %v6556_v53  ;;  %v5078_v44 = vadd.f32 %v3422_v56, %v6544_v58  ;;  %v3874_v47 = vpop.f32.mrb[82].mxu1  ;;  %4421 = vmatprep.mubr.bf16.mxu1 %v3988_v29  ;;  %v3424_v9 = vpop.f32.mrb[83].mxu0  ;;  %4325 = vmatmul.mubr.bf16.gmra.mrb[108].mxu0 %v3985_v46  ;;  %v3941_v27 = vmax.f32 %v5076_v40, 0.0 }
 0x2fd   : > { %v5110_v18 = vadd.f32 %v3874_v47, %v6548_v2  ;;  %v5079_v41 = vadd.f32 %v3424_v9, %v6552_v1  ;;  %v3876_v19 = vpop.f32.mrb[83].mxu1  ;;  %4422 = vmatmul.mubr.bf16.gmra.mrb[108].mxu1 %v3987_v33  ;;  %v3943_v54 = vmax.f32 %v5108_v24, 0.0  ;;  %v3942_v62 = vmax.f32 %v5077_v50, 0.0 }
 0x2fe   : > { %v3945_v10 = vmax.f32 %v5078_v44, 0.0  ;;  %v5111_v20 = vadd.f32 %v3876_v19, %v6556_v53  ;;  %v3944_v21 = vmax.f32 %v5109_v39, 0.0 }
 0x2ff   : > { %v3947_v0 = vmax.f32 %v5110_v18, 0.0  ;;  %v3946_v30 = vmax.f32 %v5079_v41, 0.0 }
 0x300   : > { %v3989_v31 = vpack.c.bf16 %v3945_v10, %v3941_v27  ;;  %v3948_v14 = vmax.f32 %v5111_v20, 0.0 }
 0x301   : > { %v3991_v61 = vpack.c.bf16 %v3947_v0, %v3943_v54  ;;  %v3990_v34 = vpack.c.bf16 %v3946_v30, %v3942_v62  ;;  %v3428_v51 = vpop.f32.mrb[84].mxu0 }
 0x302   : > { %v3992_v3 = vpack.c.bf16 %v3948_v14, %v3944_v21  ;;  %v5080_v42 = vadd.f32 %v3428_v51, %v6544_v58  ;;  %v3880_v25 = vpop.f32.mrb[84].mxu1  ;;  %v3430_v5 = vpop.f32.mrb[85].mxu0 }
 0x303   : > { %v5112_v63 = vadd.f32 %v3880_v25, %v6548_v2  ;;  %v5081_v28 = vadd.f32 %v3430_v5, %v6552_v1  ;;  %v3882_v59 = vpop.f32.mrb[85].mxu1  ;;  %v3432_v4 = vpop.f32.mrb[86].mxu0  ;;  %4332 = vmatprep.mubr.bf16.mxu0 %v3990_v34 }
 0x304   : > { %v5113_v6 = vadd.f32 %v3882_v59, %v6556_v53  ;;  %v5082_v52 = vadd.f32 %v3432_v4, %v6544_v58  ;;  %v3884_v43 = vpop.f32.mrb[86].mxu1  ;;  %4429 = vmatprep.mubr.bf16.mxu1 %v3992_v3  ;;  %v3434_v26 = vpop.f32.mrb[87].mxu0  ;;  %4333 = vmatmul.mubr.bf16.gmra.mrb[112].mxu0 %v3989_v31  ;;  %v3949_v8 = vmax.f32 %v5080_v42, 0.0 }
 0x305   : > { %v5114_v57 = vadd.f32 %v3884_v43, %v6548_v2  ;;  %v5083_v55 = vadd.f32 %v3434_v26, %v6552_v1  ;;  %v3886_v7 = vpop.f32.mrb[87].mxu1  ;;  %4430 = vmatmul.mubr.bf16.gmra.mrb[112].mxu1 %v3991_v61  ;;  %v3951_v17 = vmax.f32 %v5112_v63, 0.0  ;;  %v3950_v15 = vmax.f32 %v5081_v28, 0.0 }
 0x306   : > { %v3953_v37 = vmax.f32 %v5082_v52, 0.0  ;;  %v5115_v16 = vadd.f32 %v3886_v7, %v6556_v53  ;;  %v3952_v13 = vmax.f32 %v5113_v6, 0.0 }
 0x307   : > { %v3955_v12 = vmax.f32 %v5114_v57, 0.0  ;;  %v3954_v22 = vmax.f32 %v5083_v55, 0.0 }
 0x308   : > { %v3993_v38 = vpack.c.bf16 %v3953_v37, %v3949_v8  ;;  %v3956_v32 = vmax.f32 %v5115_v16, 0.0 }
 0x309   : > { %v3995_v35 = vpack.c.bf16 %v3955_v12, %v3951_v17  ;;  %v3994_v49 = vpack.c.bf16 %v3954_v22, %v3950_v15  ;;  %v3438_v46 = vpop.f32.mrb[88].mxu0 }
 0x30a   : > { %v3996_v11 = vpack.c.bf16 %v3956_v32, %v3952_v13  ;;  %v5084_v33 = vadd.f32 %v3438_v46, %v6544_v58  ;;  %v3890_v36 = vpop.f32.mrb[88].mxu1  ;;  %v3440_v23 = vpop.f32.mrb[89].mxu0 }
 0x30b   : > { %v5116_v29 = vadd.f32 %v3890_v36, %v6548_v2  ;;  %v5085_v40 = vadd.f32 %v3440_v23, %v6552_v1  ;;  %v3892_v45 = vpop.f32.mrb[89].mxu1  ;;  %v3442_v60 = vpop.f32.mrb[90].mxu0  ;;  %4340 = vmatprep.mubr.bf16.mxu0 %v3994_v49 }
 0x30c   : > { %v5117_v24 = vadd.f32 %v3892_v45, %v6556_v53  ;;  %v5086_v50 = vadd.f32 %v3442_v60, %v6544_v58  ;;  %v3894_v48 = vpop.f32.mrb[90].mxu1  ;;  %4437 = vmatprep.mubr.bf16.mxu1 %v3996_v11  ;;  %v3444_v56 = vpop.f32.mrb[91].mxu0  ;;  %4341 = vmatmul.mubr.bf16.gmra.mrb[116].mxu0 %v3993_v38  ;;  %v3957_v9 = vmax.f32 %v5084_v33, 0.0 }
 0x30d   : > { %v5118_v39 = vadd.f32 %v3894_v48, %v6548_v2  ;;  %v5087_v44 = vadd.f32 %v3444_v56, %v6552_v1  ;;  %v3896_v47 = vpop.f32.mrb[91].mxu1  ;;  %4438 = vmatmul.mubr.bf16.gmra.mrb[116].mxu1 %v3995_v35  ;;  %v3959_v19 = vmax.f32 %v5116_v29, 0.0  ;;  %v3958_v27 = vmax.f32 %v5085_v40, 0.0 }
 0x30e   : > { %v3961_v18 = vmax.f32 %v5086_v50, 0.0  ;;  %v5119_v41 = vadd.f32 %v3896_v47, %v6556_v53  ;;  %v3960_v54 = vmax.f32 %v5117_v24, 0.0 }
 0x30f   : > { %v3963_v10 = vmax.f32 %v5118_v39, 0.0  ;;  %v3962_v20 = vmax.f32 %v5087_v44, 0.0 }
 0x310   : > { %v3997_v62 = vpack.c.bf16 %v3961_v18, %v3957_v9  ;;  %v3964_v0 = vmax.f32 %v5119_v41, 0.0 }
 0x311   : > { %v3999_v30 = vpack.c.bf16 %v3963_v10, %v3959_v19  ;;  %v3998_v21 = vpack.c.bf16 %v3962_v20, %v3958_v27  ;;  %v3448_v31 = vpop.f32.mrb[92].mxu0 }
 0x312   : > { %v4000_v14 = vpack.c.bf16 %v3964_v0, %v3960_v54  ;;  %v5088_v61 = vadd.f32 %v3448_v31, %v6544_v58  ;;  %v3900_v34 = vpop.f32.mrb[92].mxu1  ;;  %v3450_v51 = vpop.f32.mrb[93].mxu0 }
 0x313   : > { %v5120_v3 = vadd.f32 %v3900_v34, %v6548_v2  ;;  %v5089_v42 = vadd.f32 %v3450_v51, %v6552_v1  ;;  %v3902_v25 = vpop.f32.mrb[93].mxu1  ;;  %v3452_v5 = vpop.f32.mrb[94].mxu0  ;;  %4348 = vmatprep.mubr.bf16.mxu0 %v3998_v21 }
 0x314   : > { %v5121_v63 = vadd.f32 %v3902_v25, %v6556_v53  ;;  %v5090_v28 = vadd.f32 %v3452_v5, %v6544_v58  ;;  %v3904_v59 = vpop.f32.mrb[94].mxu1  ;;  %4445 = vmatprep.mubr.bf16.mxu1 %v4000_v14  ;;  %v3454_v4 = vpop.f32.mrb[95].mxu0  ;;  %4349 = vmatmul.mubr.bf16.gmra.mrb[120].mxu0 %v3997_v62  ;;  %v3965_v26 = vmax.f32 %v5088_v61, 0.0 }
 0x315   : > { %v5122_v6 = vadd.f32 %v3904_v59, %v6548_v2  ;;  %v5091_v52 = vadd.f32 %v3454_v4, %v6552_v1  ;;  %v3906_v43 = vpop.f32.mrb[95].mxu1  ;;  %4446 = vmatmul.mubr.bf16.gmra.mrb[120].mxu1 %v3999_v30  ;;  %v3967_v7 = vmax.f32 %v5120_v3, 0.0  ;;  %v3966_v8 = vmax.f32 %v5089_v42, 0.0 }
 0x316   : > { %v3969_v57 = vmax.f32 %v5090_v28, 0.0  ;;  %v5123_v55 = vadd.f32 %v3906_v43, %v6556_v53  ;;  %v3968_v58 = vmax.f32 %v5121_v63, 0.0  ;;  %v6625_v53 = vld [vmem:[%s6674_s6] ss:$0 sm:$0xff] }
 0x317   : > { %v3971_v37 = vmax.f32 %v5122_v6, 0.0  ;;  %v3970_v16 = vmax.f32 %v5091_v52, 0.0 }
 0x318   : > { %v4001_v17 = vpack.c.bf16 %v3969_v57, %v3965_v26  ;;  %v3972_v15 = vmax.f32 %v5123_v55, 0.0 }
 0x319   : > { %v4003_v12 = vpack.c.bf16 %v3971_v37, %v3967_v7  ;;  %v4002_v22 = vpack.c.bf16 %v3970_v16, %v3966_v8 }
 0x31a   : > { %v4004_v13 = vpack.c.bf16 %v3972_v15, %v3968_v58 }
 0x31b   : > { %4356 = vmatprep.mubr.bf16.mxu0 %v4002_v22 }
 0x31c   : > { %4453 = vmatprep.mubr.bf16.mxu1 %v4004_v13  ;;  %4357 = vmatmul.mubr.bf16.gmra.mrb[124].mxu0 %v4001_v17 }
 0x31d   : > { %4454 = vmatmul.mubr.bf16.gmra.mrb[124].mxu1 %v4003_v12 }
 0x3b7   : > { %v4948_v2 = vpop.f32.mrb[96].mxu0 }
 0x3b8   : > { %v5012_v1 = vpop.f32.mrb[96].mxu1  ;;  %v4949_v38 = vpop.f32.mrb[97].mxu0 }
 0x3b9   : > { %v4950_v32 = vadd.f32 %v4949_v38, %v4948_v2  ;;  %v5013_v35 = vpop.f32.mrb[97].mxu1  ;;  %v4951_v49 = vpop.f32.mrb[98].mxu0 }
 0x3ba   : > { %v5014_v46 = vadd.f32 %v5013_v35, %v5012_v1  ;;  %v5015_v11 = vpop.f32.mrb[98].mxu1  ;;  %v4952_v33 = vpop.f32.mrb[99].mxu0 }
 0x3bb   : > { %v4303_v36 = vadd.f32 %v4950_v32, %v6625_v53  ;;  %v4953_v23 = vadd.f32 %v4952_v33, %v4951_v49  ;;  %v5016_v29 = vpop.f32.mrb[99].mxu1 }
 0x3bc   : > { %v5017_v40 = vadd.f32 %v5016_v29, %v5015_v11 }
 0x3bd   : > { %v4400_v45 = vadd.f32 %v5014_v46, %v4303_v36  ;;  %v4306_v60 = vadd.f32 %v4953_v23, %v6625_v53 }
 0x3bf   : > { %4462 = vst [vmem:[%s6632_s11] sm:$0xff] %v4400_v45  ;;  %v4403_v24 = vadd.f32 %v5017_v40, %v4306_v60  ;;  %v4954_v50 = vpop.f32.mrb[100].mxu0 }
 0x3c0   : > { %v5018_v48 = vpop.f32.mrb[100].mxu1  ;;  %v4955_v56 = vpop.f32.mrb[101].mxu0 }
 0x3c1   : > { %4463 = vst [vmem:[%s6632_s11 + $0x8] sm:$0xff] %v4403_v24  ;;  %v4956_v39 = vadd.f32 %v4955_v56, %v4954_v50  ;;  %v5019_v44 = vpop.f32.mrb[101].mxu1  ;;  %v4957_v47 = vpop.f32.mrb[102].mxu0 }
 0x3c2   : > { %v5020_v9 = vadd.f32 %v5019_v44, %v5018_v48  ;;  %v5021_v18 = vpop.f32.mrb[102].mxu1  ;;  %v4958_v41 = vpop.f32.mrb[103].mxu0 }
 0x3c3   : > { %v4311_v19 = vadd.f32 %v4956_v39, %v6625_v53  ;;  %v4959_v27 = vadd.f32 %v4958_v41, %v4957_v47  ;;  %v5022_v10 = vpop.f32.mrb[103].mxu1 }
 0x3c4   : > { %v5023_v20 = vadd.f32 %v5022_v10, %v5021_v18 }
 0x3c5   : > { %v4408_v54 = vadd.f32 %v5020_v9, %v4311_v19  ;;  %v4314_v62 = vadd.f32 %v4959_v27, %v6625_v53 }
 0x3c7   : > { %4464 = vst [vmem:[%s6632_s11 + $0x10] sm:$0xff] %v4408_v54  ;;  %v4411_v0 = vadd.f32 %v5023_v20, %v4314_v62  ;;  %v4960_v30 = vpop.f32.mrb[104].mxu0 }
 0x3c8   : > { %v5024_v21 = vpop.f32.mrb[104].mxu1  ;;  %v4961_v31 = vpop.f32.mrb[105].mxu0 }
 0x3c9   : > { %4465 = vst [vmem:[%s6632_s11 + $0x18] sm:$0xff] %v4411_v0  ;;  %v4962_v14 = vadd.f32 %v4961_v31, %v4960_v30  ;;  %v5025_v61 = vpop.f32.mrb[105].mxu1  ;;  %v4963_v34 = vpop.f32.mrb[106].mxu0 }
 0x3ca   : > { %v5026_v51 = vadd.f32 %v5025_v61, %v5024_v21  ;;  %v5027_v3 = vpop.f32.mrb[106].mxu1  ;;  %v4964_v42 = vpop.f32.mrb[107].mxu0 }
 0x3cb   : > { %v4319_v25 = vadd.f32 %v4962_v14, %v6625_v53  ;;  %v4965_v5 = vadd.f32 %v4964_v42, %v4963_v34  ;;  %v5028_v63 = vpop.f32.mrb[107].mxu1 }
 0x3cc   : > { %v5029_v28 = vadd.f32 %v5028_v63, %v5027_v3 }
 0x3cd   : > { %v4416_v59 = vadd.f32 %v5026_v51, %v4319_v25  ;;  %v4322_v4 = vadd.f32 %v4965_v5, %v6625_v53 }
 0x3cf   : > { %4466 = vst [vmem:[%s6632_s11 + $0x20] sm:$0xff] %v4416_v59  ;;  %v4419_v6 = vadd.f32 %v5029_v28, %v4322_v4  ;;  %v4966_v52 = vpop.f32.mrb[108].mxu0 }
 0x3d0   : > { %v5030_v43 = vpop.f32.mrb[108].mxu1  ;;  %v4967_v26 = vpop.f32.mrb[109].mxu0 }
 0x3d1   : > { %4467 = vst [vmem:[%s6632_s11 + $0x28] sm:$0xff] %v4419_v6  ;;  %v4968_v57 = vadd.f32 %v4967_v26, %v4966_v52  ;;  %v5031_v55 = vpop.f32.mrb[109].mxu1  ;;  %v4969_v7 = vpop.f32.mrb[110].mxu0 }
 0x3d2   : > { %v5032_v8 = vadd.f32 %v5031_v55, %v5030_v43  ;;  %v5033_v37 = vpop.f32.mrb[110].mxu1  ;;  %v4970_v16 = vpop.f32.mrb[111].mxu0 }
 0x3d3   : > { %v4327_v58 = vadd.f32 %v4968_v57, %v6625_v53  ;;  %v4971_v17 = vadd.f32 %v4970_v16, %v4969_v7  ;;  %v5034_v15 = vpop.f32.mrb[111].mxu1 }
 0x3d4   : > { %v5035_v12 = vadd.f32 %v5034_v15, %v5033_v37 }
 0x3d5   : > { %v4424_v22 = vadd.f32 %v5032_v8, %v4327_v58  ;;  %v4330_v13 = vadd.f32 %v4971_v17, %v6625_v53 }
 0x3d7   : > { %4468 = vst [vmem:[%s6632_s11 + $0x30] sm:$0xff] %v4424_v22  ;;  %v4427_v2 = vadd.f32 %v5035_v12, %v4330_v13  ;;  %v4972_v1 = vpop.f32.mrb[112].mxu0 }
 0x3d8   : > { %v5036_v38 = vpop.f32.mrb[112].mxu1  ;;  %v4973_v32 = vpop.f32.mrb[113].mxu0 }
 0x3d9   : > { %4469 = vst [vmem:[%s6632_s11 + $0x38] sm:$0xff] %v4427_v2  ;;  %v4974_v35 = vadd.f32 %v4973_v32, %v4972_v1  ;;  %v5037_v49 = vpop.f32.mrb[113].mxu1  ;;  %v4975_v46 = vpop.f32.mrb[114].mxu0 }
 0x3da   : > { %v5038_v11 = vadd.f32 %v5037_v49, %v5036_v38  ;;  %v5039_v33 = vpop.f32.mrb[114].mxu1  ;;  %v4976_v36 = vpop.f32.mrb[115].mxu0 }
 0x3db   : > { %v4335_v23 = vadd.f32 %v4974_v35, %v6625_v53  ;;  %v4977_v29 = vadd.f32 %v4976_v36, %v4975_v46  ;;  %v5040_v40 = vpop.f32.mrb[115].mxu1 }
 0x3dc   : > { %v5041_v45 = vadd.f32 %v5040_v40, %v5039_v33 }
 0x3dd   : > { %v4432_v60 = vadd.f32 %v5038_v11, %v4335_v23  ;;  %v4338_v24 = vadd.f32 %v4977_v29, %v6625_v53 }
 0x3df   : > { %4470 = vst [vmem:[%s6632_s11 + $0x40] sm:$0xff] %v4432_v60  ;;  %v4435_v50 = vadd.f32 %v5041_v45, %v4338_v24  ;;  %v4978_v48 = vpop.f32.mrb[116].mxu0 }
 0x3e0   : > { %v5042_v56 = vpop.f32.mrb[116].mxu1  ;;  %v4979_v39 = vpop.f32.mrb[117].mxu0 }
 0x3e1   : > { %4471 = vst [vmem:[%s6632_s11 + $0x48] sm:$0xff] %v4435_v50  ;;  %v4980_v44 = vadd.f32 %v4979_v39, %v4978_v48  ;;  %v5043_v47 = vpop.f32.mrb[117].mxu1  ;;  %v4981_v9 = vpop.f32.mrb[118].mxu0 }
 0x3e2   : > { %v5044_v18 = vadd.f32 %v5043_v47, %v5042_v56  ;;  %v5045_v41 = vpop.f32.mrb[118].mxu1  ;;  %v4982_v19 = vpop.f32.mrb[119].mxu0 }
 0x3e3   : > { %v4343_v27 = vadd.f32 %v4980_v44, %v6625_v53  ;;  %v4983_v10 = vadd.f32 %v4982_v19, %v4981_v9  ;;  %v5046_v20 = vpop.f32.mrb[119].mxu1 }
 0x3e4   : > { %v5047_v54 = vadd.f32 %v5046_v20, %v5045_v41 }
 0x3e5   : > { %v4440_v62 = vadd.f32 %v5044_v18, %v4343_v27  ;;  %v4346_v0 = vadd.f32 %v4983_v10, %v6625_v53 }
 0x3e7   : > { %4472 = vst [vmem:[%s6632_s11 + $0x50] sm:$0xff] %v4440_v62  ;;  %v4443_v30 = vadd.f32 %v5047_v54, %v4346_v0  ;;  %v4984_v21 = vpop.f32.mrb[120].mxu0 }
 0x3e8   : > { %v5048_v31 = vpop.f32.mrb[120].mxu1  ;;  %v4985_v14 = vpop.f32.mrb[121].mxu0 }
 0x3e9   : > { %4473 = vst [vmem:[%s6632_s11 + $0x58] sm:$0xff] %v4443_v30  ;;  %v4986_v61 = vadd.f32 %v4985_v14, %v4984_v21  ;;  %v5049_v34 = vpop.f32.mrb[121].mxu1  ;;  %v4987_v51 = vpop.f32.mrb[122].mxu0 }
 0x3ea   : > { %v5050_v3 = vadd.f32 %v5049_v34, %v5048_v31  ;;  %v5051_v42 = vpop.f32.mrb[122].mxu1  ;;  %v4988_v25 = vpop.f32.mrb[123].mxu0 }
 0x3eb   : > { %v4351_v5 = vadd.f32 %v4986_v61, %v6625_v53  ;;  %v4989_v63 = vadd.f32 %v4988_v25, %v4987_v51  ;;  %v5052_v28 = vpop.f32.mrb[123].mxu1 }
 0x3ec   : > { %v5053_v59 = vadd.f32 %v5052_v28, %v5051_v42 }
 0x3ed   : > { %v4448_v4 = vadd.f32 %v5050_v3, %v4351_v5  ;;  %v4354_v6 = vadd.f32 %v4989_v63, %v6625_v53 }
 0x3ef   : > { %4474 = vst [vmem:[%s6632_s11 + $0x60] sm:$0xff] %v4448_v4  ;;  %v4451_v52 = vadd.f32 %v5053_v59, %v4354_v6  ;;  %v4990_v43 = vpop.f32.mrb[124].mxu0 }
 0x3f0   : > { %v5054_v26 = vpop.f32.mrb[124].mxu1  ;;  %v4991_v57 = vpop.f32.mrb[125].mxu0 }
 0x3f1   : > { %4475 = vst [vmem:[%s6632_s11 + $0x68] sm:$0xff] %v4451_v52  ;;  %v4992_v55 = vadd.f32 %v4991_v57, %v4990_v43  ;;  %v5055_v7 = vpop.f32.mrb[125].mxu1  ;;  %v4993_v8 = vpop.f32.mrb[126].mxu0 }
 0x3f2   : > { %v5056_v37 = vadd.f32 %v5055_v7, %v5054_v26  ;;  %v5057_v16 = vpop.f32.mrb[126].mxu1  ;;  %v4994_v58 = vpop.f32.mrb[127].mxu0 }
 0x3f3   : > { %v4359_v17 = vadd.f32 %v4992_v55, %v6625_v53  ;;  %v4995_v15 = vadd.f32 %v4994_v58, %v4993_v8  ;;  %v5058_v12 = vpop.f32.mrb[127].mxu1 }
 0x3f4   : > { %v5059_v22 = vadd.f32 %v5058_v12, %v5057_v16 }
 0x3f5   : > { %v4456_v13 = vadd.f32 %v5056_v37, %v4359_v17  ;;  %v4362_v2 = vadd.f32 %v4995_v15, %v6625_v53 }
 0x3f7   : > { %4476 = vst [vmem:[%s6632_s11 + $0x70] sm:$0xff] %v4456_v13  ;;  %v4459_v1 = vadd.f32 %v5059_v22, %v4362_v2 }
 0x3f9   : > { %4477 = vst [vmem:[%s6632_s11 + $0x78] sm:$0xff] %v4459_v1 }
 0x3fa PF: > { %s19_s24 = sadd.s32 1, %s5844_s24  }
 0x3fb   : > { %p16_p2 = scmp.ge.s32.totalorder %s19_s24, 4  }
 0x3fd   :  { %18 = sbr.rel (!%p16_p2) target bundleno = 2 (0x2), region = 87 }
 0x404   :  { %4500 = vsyncpa [#allocation3], 1 }
 0x405   :  { %4502 = vsyncpa [#allocation3 + $0x1], 1 }
 0x406   :  { %4503 = vsyncpa [#allocation5], 1 }

</bundles_post_ra>
